<compile_context>
chip_gen: v5e
topology: v5e:2x2
jax: 0.10.0
libtpu: 0.0.40
codegen_flags: <defaults>
</compile_context>

<pallas_src>
import jax
import jax.numpy as jnp
from jax.experimental import pallas as pl
from jax.experimental.pallas import tpu as pltpu

HIDDEN_CELLS = 64
INPUT_SIZE = 7
LAYER_NUM = 5
TIME_STEP = 5


def _head(x1_ref, w1_ref, b1_ref, w1n_ref, bn2_ref, out_ref):
    """First Linear1 as one K=320 matmul; Linear1(2nd) + Linear_N21 folded into w1n/bn2."""
    l1 = jnp.dot(x1_ref[...], w1_ref[...],
                 preferred_element_type=jnp.float32) + b1_ref[...]
    final = jnp.sum(l1 * w1n_ref[...], axis=-1, keepdims=True) + bn2_ref[0, 0]
    out_ref[...] = final.astype(out_ref.dtype)


def _make_kernel(use_wavefront):
    H, L, T = HIDDEN_CELLS, LAYER_NUM, TIME_STEP

    if use_wavefront:
        # Latency-bound regime: wavefront over anti-diagonals t + l = const.
        def kernel(xp0_ref, whh0_ref, wcat_ref, brnn_ref, w1_ref, b1_ref,
                   w1n_ref, bn2_ref, out_ref, x1_ref):
            TB = xp0_ref.shape[1]
            whh0 = whh0_ref[...]                                   # (H, H) bf16
            zeros = jnp.zeros((TB, H), jnp.float32)
            # per-layer bias broadcasts hoisted out of the cell loop
            biases = [jnp.broadcast_to(brnn_ref[pl.ds(l, 1), :], (TB, H))
                      for l in range(1, L)]

            h = {}                                                 # (l, t) -> (TB, H) f32
            for d in range(T + L - 1):
                for l in range(max(0, d - T + 1), min(L, d + 1)):
                    t = d - l
                    if l == 0:
                        pre = xp0_ref[t]                           # x@Wih0 + b0 (wrapper-hoisted)
                        if t > 0:
                            pre = pre + jnp.dot(
                                h[(0, t - 1)].astype(jnp.bfloat16), whh0,
                                preferred_element_type=jnp.float32)
                    else:
                        below = h[(l - 1, t)]
                        prev = h[(l, t - 1)] if t > 0 else zeros
                        inp = jnp.concatenate([below, prev],
                                              axis=-1).astype(jnp.bfloat16)   # (TB, 2H)
                        pre = jnp.dot(inp, wcat_ref[l - 1],
                                      preferred_element_type=jnp.float32) + biases[l - 1]
                    cell = jnp.tanh(pre)
                    h[(l, t)] = cell
                    if l == L - 1:
                        # lane-offset store into the (TB, T*H) bf16 slab
                        x1_ref[:, t * H:(t + 1) * H] = cell.astype(jnp.bfloat16)

            _head(x1_ref, w1_ref, b1_ref, w1n_ref, bn2_ref, out_ref)
        return kernel

    # Throughput regime: layer-by-layer with hoisted per-layer input projection.
    def kernel(xp0_ref, whh0_ref, wcat_ref, brnn_ref, w1_ref, b1_ref,
               w1n_ref, bn2_ref, out_ref, x1_ref, hs_ref):
        TB = xp0_ref.shape[1]
        whh0 = whh0_ref[...]

        # layer 0: xp0 already holds x@Wih0 + b0
        h = jnp.zeros((TB, H), jnp.float32)
        for t in range(T):
            h = jnp.tanh(xp0_ref[t] + jnp.dot(h.astype(jnp.bfloat16), whh0,
                                              preferred_element_type=jnp.float32))
            hs_ref[t * TB:(t + 1) * TB, :] = h.astype(jnp.bfloat16)

        for l in range(1, L):
            wfull = wcat_ref[l - 1]                                # (2H, H) bf16
            wih, whh = wfull[:H, :], wfull[H:, :]
            # input projection hoisted: one (T*TB, H) @ (H, H) matmul per layer
            xp = jnp.dot(hs_ref[...], wih, preferred_element_type=jnp.float32)
            xp = xp + brnn_ref[pl.ds(l, 1), :]                     # bias hoisted out of t-loop
            h = jnp.zeros((TB, H), jnp.float32)
            for t in range(T):
                h = jnp.tanh(xp[t * TB:(t + 1) * TB, :] +
                             jnp.dot(h.astype(jnp.bfloat16), whh,
                                     preferred_element_type=jnp.float32))
                hb = h.astype(jnp.bfloat16)
                if l < L - 1:
                    hs_ref[t * TB:(t + 1) * TB, :] = hb
                else:
                    x1_ref[:, t * H:(t + 1) * H] = hb

        _head(x1_ref, w1_ref, b1_ref, w1n_ref, bn2_ref, out_ref)
    return kernel


def rnn_forward(x, params, block_batch=None, wavefront=None):
    """x: (B, T, I) f32. Returns (B, 1, 1) f32.

    block_batch=None -> single grid step over the whole (padded) batch, correct
    for single-TC v5e/v6e. On v7x pass block_batch=ceil(B/2) so the 'parallel'
    grid has exactly 2 steps (one per TensorCore)."""
    B, T, I = x.shape
    H, L = HIDDEN_CELLS, LAYER_NUM
    F = T * H
    assert T == TIME_STEP and I == INPUT_SIZE

    # Batch tile: always a multiple of 8 (sublane-aligned scratch slices/stores).
    if block_batch is None:
        tb = max(8, -(-B // 8) * 8)
    else:
        tb = max(8, ((min(block_batch, B) + 7) // 8) * 8)
    B_pad = -(-B // tb) * tb
    grid = (B_pad // tb,)

    if wavefront is None:
        wavefront = tb <= 128          # latency-bound -> wavefront; else layer-wise

    xpad = x
    if B_pad != B:
        xpad = jnp.concatenate([x, jnp.zeros((B_pad - B, T, I), x.dtype)], axis=0)

    # Layer-0 input projection + bias hoisted to the wrapper (f32, time-major,
    # lane-dense H=64) -- removes the 7->128 lane-padded x tile from the kernel.
    xp0 = jnp.einsum("bti,ih->tbh", xpad.astype(jnp.float32),
                     params["wih0"]) + params["b0"]                # (T, B_pad, H) f32

    kernel = _make_kernel(wavefront)
    scratch = [pltpu.VMEM((tb, F), jnp.bfloat16)]                  # x1 slab (final-layer h_t)
    if not wavefront:
        scratch.append(pltpu.VMEM((T * tb, H), jnp.bfloat16))      # bf16 hidden-state slab

    out = pl.pallas_call(
        kernel,
        out_shape=jax.ShapeDtypeStruct((B_pad, 1), jnp.float32),
        grid=grid,
        in_specs=[
            pl.BlockSpec((T, tb, H), lambda i: (0, i, 0)),          # xp0 (f32)
            pl.BlockSpec((H, H), lambda i: (0, 0)),                 # W_hh layer 0 (bf16)
            pl.BlockSpec((L - 1, 2 * H, H), lambda i: (0, 0, 0)),   # [W_ih; W_hh] layers 1..L-1 (bf16)
            pl.BlockSpec((L, H), lambda i: (0, 0)),                 # b_ih + b_hh (f32)
            pl.BlockSpec((F, F), lambda i: (0, 0)),                 # W1 (bf16)
            pl.BlockSpec((1, F), lambda i: (0, 0)),                 # b1 (f32)
            pl.BlockSpec((1, F), lambda i: (0, 0)),                 # (W1 @ Wn).T (f32)
            pl.BlockSpec(memory_space=pltpu.MemorySpace.SMEM),      # b1 @ Wn + bn (scalar, SMEM)
        ],
        out_specs=pl.BlockSpec((tb, 1), lambda i: (i, 0)),
        scratch_shapes=scratch,
        compiler_params=pltpu.CompilerParams(
            dimension_semantics=("parallel",)),
    )(xp0, params["whh0"], params["wcat"], params["brnn"],
      params["w1"], params["b1"], params["w1n"], params["bn2"])

    return out[:B].reshape(B, -1, 1)   # (B, 1, 1), same as .view(batch, -1, 1)


def init_params(key):
    """Raw f32 parameters, PyTorch-equivalent, stored as (in_features, out_features)."""
    H, I, L, T = HIDDEN_CELLS, INPUT_SIZE, LAYER_NUM, TIME_STEP
    ks = jax.random.split(key, 9)

    def u(k, shape, s):
        return jax.random.uniform(k, shape, jnp.float32, -s, s)

    s_rnn = 1.0 / float(H) ** 0.5
    wih0 = u(ks[0], (I, H), s_rnn)               # layer 0 W_ih^T
    wih = u(ks[1], (L - 1, H, H), s_rnn)          # layers 1..L-1 W_ih^T
    whh = u(ks[2], (L, H, H), s_rnn)              # W_hh^T
    brnn = u(ks[3], (L, H), s_rnn) + u(ks[4], (L, H), s_rnn)   # b_ih + b_hh

    F = T * H
    s_lin = 1.0 / float(F) ** 0.5
    w1 = u(ks[5], (F, F), s_lin)                  # Linear1 weight^T
    b1 = u(ks[6], (1, F), s_lin)
    wn = u(ks[7], (F, 1), s_lin)                  # Linear_N21 weight^T
    bn = u(ks[8], (1, 1), s_lin)

    return dict(wih0=wih0, wih=wih, whh=whh, brnn=brnn, w1=w1, b1=b1, wn=wn, bn=bn)


def prepare_params(p):
    """Wrapper-side layout prep: bf16 matmul weights, [W_ih;W_hh] stacking, head fold."""
    w1, wn, b1, bn = p["w1"], p["wn"], p["b1"], p["bn"]
    w1n = (w1 @ wn).T                             # (1, F): folds 2nd Linear1 into Linear_N21
    bn2 = b1 @ wn + bn                            # (1, 1)
    wcat = jnp.concatenate([p["wih"], p["whh"][1:]], axis=1)      # (L-1, 2H, H)
    return dict(
        wih0=p["wih0"].astype(jnp.float32),       # used wrapper-side (f32 projection)
        b0=p["brnn"][0].astype(jnp.float32),      # layer-0 bias, folded into xp0
        whh0=p["whh"][0].astype(jnp.bfloat16),
        wcat=wcat.astype(jnp.bfloat16),
        brnn=p["brnn"].astype(jnp.float32),
        w1=w1.astype(jnp.bfloat16),
        b1=b1.astype(jnp.float32),
        w1n=w1n.astype(jnp.float32),
        bn2=bn2.astype(jnp.float32),
    )


def rnn_reference(x, p):
    """Pure-JAX f32 reference reproducing the PyTorch forward exactly."""
    B, T, _ = x.shape
    inp = x.astype(jnp.float32)
    for l in range(LAYER_NUM):
        w_ih = p["wih0"] if l == 0 else p["wih"][l - 1]
        w_hh = p["whh"][l]
        b = p["brnn"][l]
        h = jnp.zeros((B, HIDDEN_CELLS), jnp.float32)
        outs = []
        for t in range(T):
            h = jnp.tanh(inp[:, t, :] @ w_ih + h @ w_hh + b)
            outs.append(h)
        inp = jnp.stack(outs, axis=1)
    x1 = inp.reshape(B, -1)
    l1 = x1 @ p["w1"] + p["b1"]
    l2 = l1 @ p["w1"] + p["b1"]
    out = l2 @ p["wn"] + p["bn"]
    return out.reshape(B, -1, 1)


if __name__ == "__main__":
    key = jax.random.PRNGKey(0)
    k_x, k_p, k_x2 = jax.random.split(key, 3)

    raw = init_params(k_p)
    params = prepare_params(raw)

    # Small-batch (latency) path: wavefront schedule, batch padded 2 -> 8.
    batch = 2
    x = jax.random.normal(k_x, (batch, TIME_STEP, INPUT_SIZE), dtype=jnp.float32)
    out = rnn_forward(x, params)
    jax.block_until_ready(out)
    assert out.shape == (batch, 1, 1), out.shape
    assert bool(jnp.all(jnp.isfinite(out)))
    err = float(jnp.max(jnp.abs(out - rnn_reference(x, raw))))
    assert err < 5e-2, f"wavefront path: max abs error vs f32 reference = {err}"

    # Throughput path: layer-wise schedule with the bf16 hidden-state slab.
    batch2 = 16
    x2 = jax.random.normal(k_x2, (batch2, TIME_STEP, INPUT_SIZE), dtype=jnp.float32)
    out2 = rnn_forward(x2, params, block_batch=batch2, wavefront=False)
    jax.block_until_ready(out2)
    assert out2.shape == (batch2, 1, 1), out2.shape
    assert bool(jnp.all(jnp.isfinite(out2)))
    err2 = float(jnp.max(jnp.abs(out2 - rnn_reference(x2, raw))))
    assert err2 < 5e-2, f"layer-wise path: max abs error vs f32 reference = {err2}"

    print("KERNEL_OK")
</pallas_src>

<mosaic_0001>
module attributes {stable_mosaic.version = 11 : i64} {
  func.func @kernel(%arg0: i32, %arg1: memref<5x8x64xf32, #tpu.memory_space<vmem>>, %arg2: memref<64x64xbf16, #tpu.memory_space<vmem>>, %arg3: memref<4x128x64xbf16, #tpu.memory_space<vmem>>, %arg4: memref<5x64xf32, #tpu.memory_space<vmem>>, %arg5: memref<320x320xbf16, #tpu.memory_space<vmem>>, %arg6: memref<1x320xf32, #tpu.memory_space<vmem>>, %arg7: memref<1x320xf32, #tpu.memory_space<vmem>>, %arg8: memref<1x1xf32, #tpu.memory_space<smem>>, %arg9: memref<8x1xf32, #tpu.memory_space<vmem>>, %arg10: memref<8x320xbf16, #tpu.memory_space<vmem>>) attributes {dimension_semantics = [#tpu.dimension_semantics<parallel>], iteration_bounds = array<i64: 1>, scalar_prefetch = 0 : i64, scratch_operands = 1 : i64, tpu.core_type = #tpu.core_type<tc>, window_params = [{transform_indices = @transform_0, window_bounds = array<i64: 5, 8, 64>}, {pipeline_mode = #tpu.pipeline_mode<synchronous>, transform_indices = @transform_1, window_bounds = array<i64: 64, 64>}, {pipeline_mode = #tpu.pipeline_mode<synchronous>, transform_indices = @transform_2, window_bounds = array<i64: 4, 128, 64>}, {pipeline_mode = #tpu.pipeline_mode<synchronous>, transform_indices = @transform_3, window_bounds = array<i64: 5, 64>}, {pipeline_mode = #tpu.pipeline_mode<synchronous>, transform_indices = @transform_4, window_bounds = array<i64: 320, 320>}, {pipeline_mode = #tpu.pipeline_mode<synchronous>, transform_indices = @transform_5, window_bounds = array<i64: 1, 320>}, {pipeline_mode = #tpu.pipeline_mode<synchronous>, transform_indices = @transform_6, window_bounds = array<i64: 1, 320>}, {transform_indices = @transform_7, window_bounds = array<i64: 1, 1>}, {transform_indices = @transform_8, window_bounds = array<i64: 8, 1>}]} {
    %c0 = arith.constant 0 : index
    %c0_0 = arith.constant 0 : index
    %0 = vector.load %arg2[%c0, %c0_0] : memref<64x64xbf16, #tpu.memory_space<vmem>>, vector<64x64xbf16>
    %cst = arith.constant 0.000000e+00 : f32
    %1 = vector.broadcast %cst : f32 to vector<8x64xf32>
    %c1 = arith.constant 1 : index
    %c0_1 = arith.constant 0 : index
    %2 = vector.load %arg4[%c1, %c0_1] : memref<5x64xf32, #tpu.memory_space<vmem>>, vector<1x64xf32>
    %3 = vector.shape_cast %2 : vector<1x64xf32> to vector<1x64xf32>
    %4 = vector.broadcast %3 : vector<1x64xf32> to vector<8x64xf32>
    %c2 = arith.constant 2 : index
    %c0_2 = arith.constant 0 : index
    %5 = vector.load %arg4[%c2, %c0_2] : memref<5x64xf32, #tpu.memory_space<vmem>>, vector<1x64xf32>
    %6 = vector.shape_cast %5 : vector<1x64xf32> to vector<1x64xf32>
    %7 = vector.broadcast %6 : vector<1x64xf32> to vector<8x64xf32>
    %c3 = arith.constant 3 : index
    %c0_3 = arith.constant 0 : index
    %8 = vector.load %arg4[%c3, %c0_3] : memref<5x64xf32, #tpu.memory_space<vmem>>, vector<1x64xf32>
    %9 = vector.shape_cast %8 : vector<1x64xf32> to vector<1x64xf32>
    %10 = vector.broadcast %9 : vector<1x64xf32> to vector<8x64xf32>
    %c4 = arith.constant 4 : index
    %c0_4 = arith.constant 0 : index
    %11 = vector.load %arg4[%c4, %c0_4] : memref<5x64xf32, #tpu.memory_space<vmem>>, vector<1x64xf32>
    %12 = vector.shape_cast %11 : vector<1x64xf32> to vector<1x64xf32>
    %13 = vector.broadcast %12 : vector<1x64xf32> to vector<8x64xf32>
    %c0_5 = arith.constant 0 : index
    %c0_6 = arith.constant 0 : index
    %c0_7 = arith.constant 0 : index
    %14 = vector.load %arg1[%c0_5, %c0_6, %c0_7] : memref<5x8x64xf32, #tpu.memory_space<vmem>>, vector<1x8x64xf32>
    %15 = vector.shape_cast %14 : vector<1x8x64xf32> to vector<8x64xf32>
    %16 = math.tanh %15 : vector<8x64xf32>
    %c1_8 = arith.constant 1 : index
    %c0_9 = arith.constant 0 : index
    %c0_10 = arith.constant 0 : index
    %17 = vector.load %arg1[%c1_8, %c0_9, %c0_10] : memref<5x8x64xf32, #tpu.memory_space<vmem>>, vector<1x8x64xf32>
    %18 = vector.shape_cast %17 : vector<1x8x64xf32> to vector<8x64xf32>
    %19 = arith.truncf %16 : vector<8x64xf32> to vector<8x64xbf16>
    %cst_11 = arith.constant dense<0.000000e+00> : vector<8x64xf32>
    %20 = tpu.matmul %19, %0, %cst_11 {dimension_numbers = #tpu.dot_dimension_numbers<[1], [0], [0], [1], [0, 0, 1, 1], [], []>} : vector<8x64xbf16>, vector<64x64xbf16>, vector<8x64xf32> -> vector<8x64xf32>
    %21 = arith.addf %18, %20 : vector<8x64xf32>
    %22 = math.tanh %21 : vector<8x64xf32>
    %23 = tpu.concatenate %16, %1 in 1 : vector<8x64xf32>, vector<8x64xf32> -> vector<8x128xf32>
    %24 = arith.truncf %23 : vector<8x128xf32> to vector<8x128xbf16>
    %c0_12 = arith.constant 0 : index
    %c0_13 = arith.constant 0 : index
    %c0_14 = arith.constant 0 : index
    %25 = vector.load %arg3[%c0_12, %c0_13, %c0_14] : memref<4x128x64xbf16, #tpu.memory_space<vmem>>, vector<1x128x64xbf16>
    %26 = vector.shape_cast %25 : vector<1x128x64xbf16> to vector<128x64xbf16>
    %cst_15 = arith.constant dense<0.000000e+00> : vector<8x64xf32>
    %27 = tpu.matmul %24, %26, %cst_15 {dimension_numbers = #tpu.dot_dimension_numbers<[1], [0], [0], [1], [0, 0, 1, 1], [], []>} : vector<8x128xbf16>, vector<128x64xbf16>, vector<8x64xf32> -> vector<8x64xf32>
    %28 = arith.addf %27, %4 : vector<8x64xf32>
    %29 = math.tanh %28 : vector<8x64xf32>
    %c2_16 = arith.constant 2 : index
    %c0_17 = arith.constant 0 : index
    %c0_18 = arith.constant 0 : index
    %30 = vector.load %arg1[%c2_16, %c0_17, %c0_18] : memref<5x8x64xf32, #tpu.memory_space<vmem>>, vector<1x8x64xf32>
    %31 = vector.shape_cast %30 : vector<1x8x64xf32> to vector<8x64xf32>
    %32 = arith.truncf %22 : vector<8x64xf32> to vector<8x64xbf16>
    %cst_19 = arith.constant dense<0.000000e+00> : vector<8x64xf32>
    %33 = tpu.matmul %32, %0, %cst_19 {dimension_numbers = #tpu.dot_dimension_numbers<[1], [0], [0], [1], [0, 0, 1, 1], [], []>} : vector<8x64xbf16>, vector<64x64xbf16>, vector<8x64xf32> -> vector<8x64xf32>
    %34 = arith.addf %31, %33 : vector<8x64xf32>
    %35 = math.tanh %34 : vector<8x64xf32>
    %36 = tpu.concatenate %22, %29 in 1 : vector<8x64xf32>, vector<8x64xf32> -> vector<8x128xf32>
    %37 = arith.truncf %36 : vector<8x128xf32> to vector<8x128xbf16>
    %c0_20 = arith.constant 0 : index
    %c0_21 = arith.constant 0 : index
    %c0_22 = arith.constant 0 : index
    %38 = vector.load %arg3[%c0_20, %c0_21, %c0_22] : memref<4x128x64xbf16, #tpu.memory_space<vmem>>, vector<1x128x64xbf16>
    %39 = vector.shape_cast %38 : vector<1x128x64xbf16> to vector<128x64xbf16>
    %cst_23 = arith.constant dense<0.000000e+00> : vector<8x64xf32>
    %40 = tpu.matmul %37, %39, %cst_23 {dimension_numbers = #tpu.dot_dimension_numbers<[1], [0], [0], [1], [0, 0, 1, 1], [], []>} : vector<8x128xbf16>, vector<128x64xbf16>, vector<8x64xf32> -> vector<8x64xf32>
    %41 = arith.addf %40, %4 : vector<8x64xf32>
    %42 = math.tanh %41 : vector<8x64xf32>
    %43 = tpu.concatenate %29, %1 in 1 : vector<8x64xf32>, vector<8x64xf32> -> vector<8x128xf32>
    %44 = arith.truncf %43 : vector<8x128xf32> to vector<8x128xbf16>
    %c1_24 = arith.constant 1 : index
    %c0_25 = arith.constant 0 : index
    %c0_26 = arith.constant 0 : index
    %45 = vector.load %arg3[%c1_24, %c0_25, %c0_26] : memref<4x128x64xbf16, #tpu.memory_space<vmem>>, vector<1x128x64xbf16>
    %46 = vector.shape_cast %45 : vector<1x128x64xbf16> to vector<128x64xbf16>
    %cst_27 = arith.constant dense<0.000000e+00> : vector<8x64xf32>
    %47 = tpu.matmul %44, %46, %cst_27 {dimension_numbers = #tpu.dot_dimension_numbers<[1], [0], [0], [1], [0, 0, 1, 1], [], []>} : vector<8x128xbf16>, vector<128x64xbf16>, vector<8x64xf32> -> vector<8x64xf32>
    %48 = arith.addf %47, %7 : vector<8x64xf32>
    %49 = math.tanh %48 : vector<8x64xf32>
    %c3_28 = arith.constant 3 : index
    %c0_29 = arith.constant 0 : index
    %c0_30 = arith.constant 0 : index
    %50 = vector.load %arg1[%c3_28, %c0_29, %c0_30] : memref<5x8x64xf32, #tpu.memory_space<vmem>>, vector<1x8x64xf32>
    %51 = vector.shape_cast %50 : vector<1x8x64xf32> to vector<8x64xf32>
    %52 = arith.truncf %35 : vector<8x64xf32> to vector<8x64xbf16>
    %cst_31 = arith.constant dense<0.000000e+00> : vector<8x64xf32>
    %53 = tpu.matmul %52, %0, %cst_31 {dimension_numbers = #tpu.dot_dimension_numbers<[1], [0], [0], [1], [0, 0, 1, 1], [], []>} : vector<8x64xbf16>, vector<64x64xbf16>, vector<8x64xf32> -> vector<8x64xf32>
    %54 = arith.addf %51, %53 : vector<8x64xf32>
    %55 = math.tanh %54 : vector<8x64xf32>
    %56 = tpu.concatenate %35, %42 in 1 : vector<8x64xf32>, vector<8x64xf32> -> vector<8x128xf32>
    %57 = arith.truncf %56 : vector<8x128xf32> to vector<8x128xbf16>
    %c0_32 = arith.constant 0 : index
    %c0_33 = arith.constant 0 : index
    %c0_34 = arith.constant 0 : index
    %58 = vector.load %arg3[%c0_32, %c0_33, %c0_34] : memref<4x128x64xbf16, #tpu.memory_space<vmem>>, vector<1x128x64xbf16>
    %59 = vector.shape_cast %58 : vector<1x128x64xbf16> to vector<128x64xbf16>
    %cst_35 = arith.constant dense<0.000000e+00> : vector<8x64xf32>
    %60 = tpu.matmul %57, %59, %cst_35 {dimension_numbers = #tpu.dot_dimension_numbers<[1], [0], [0], [1], [0, 0, 1, 1], [], []>} : vector<8x128xbf16>, vector<128x64xbf16>, vector<8x64xf32> -> vector<8x64xf32>
    %61 = arith.addf %60, %4 : vector<8x64xf32>
    %62 = math.tanh %61 : vector<8x64xf32>
    %63 = tpu.concatenate %42, %49 in 1 : vector<8x64xf32>, vector<8x64xf32> -> vector<8x128xf32>
    %64 = arith.truncf %63 : vector<8x128xf32> to vector<8x128xbf16>
    %c1_36 = arith.constant 1 : index
    %c0_37 = arith.constant 0 : index
    %c0_38 = arith.constant 0 : index
    %65 = vector.load %arg3[%c1_36, %c0_37, %c0_38] : memref<4x128x64xbf16, #tpu.memory_space<vmem>>, vector<1x128x64xbf16>
    %66 = vector.shape_cast %65 : vector<1x128x64xbf16> to vector<128x64xbf16>
    %cst_39 = arith.constant dense<0.000000e+00> : vector<8x64xf32>
    %67 = tpu.matmul %64, %66, %cst_39 {dimension_numbers = #tpu.dot_dimension_numbers<[1], [0], [0], [1], [0, 0, 1, 1], [], []>} : vector<8x128xbf16>, vector<128x64xbf16>, vector<8x64xf32> -> vector<8x64xf32>
    %68 = arith.addf %67, %7 : vector<8x64xf32>
    %69 = math.tanh %68 : vector<8x64xf32>
    %70 = tpu.concatenate %49, %1 in 1 : vector<8x64xf32>, vector<8x64xf32> -> vector<8x128xf32>
    %71 = arith.truncf %70 : vector<8x128xf32> to vector<8x128xbf16>
    %c2_40 = arith.constant 2 : index
    %c0_41 = arith.constant 0 : index
    %c0_42 = arith.constant 0 : index
    %72 = vector.load %arg3[%c2_40, %c0_41, %c0_42] : memref<4x128x64xbf16, #tpu.memory_space<vmem>>, vector<1x128x64xbf16>
    %73 = vector.shape_cast %72 : vector<1x128x64xbf16> to vector<128x64xbf16>
    %cst_43 = arith.constant dense<0.000000e+00> : vector<8x64xf32>
    %74 = tpu.matmul %71, %73, %cst_43 {dimension_numbers = #tpu.dot_dimension_numbers<[1], [0], [0], [1], [0, 0, 1, 1], [], []>} : vector<8x128xbf16>, vector<128x64xbf16>, vector<8x64xf32> -> vector<8x64xf32>
    %75 = arith.addf %74, %10 : vector<8x64xf32>
    %76 = math.tanh %75 : vector<8x64xf32>
    %c4_44 = arith.constant 4 : index
    %c0_45 = arith.constant 0 : index
    %c0_46 = arith.constant 0 : index
    %77 = vector.load %arg1[%c4_44, %c0_45, %c0_46] : memref<5x8x64xf32, #tpu.memory_space<vmem>>, vector<1x8x64xf32>
    %78 = vector.shape_cast %77 : vector<1x8x64xf32> to vector<8x64xf32>
    %79 = arith.truncf %55 : vector<8x64xf32> to vector<8x64xbf16>
    %cst_47 = arith.constant dense<0.000000e+00> : vector<8x64xf32>
    %80 = tpu.matmul %79, %0, %cst_47 {dimension_numbers = #tpu.dot_dimension_numbers<[1], [0], [0], [1], [0, 0, 1, 1], [], []>} : vector<8x64xbf16>, vector<64x64xbf16>, vector<8x64xf32> -> vector<8x64xf32>
    %81 = arith.addf %78, %80 : vector<8x64xf32>
    %82 = math.tanh %81 : vector<8x64xf32>
    %83 = tpu.concatenate %55, %62 in 1 : vector<8x64xf32>, vector<8x64xf32> -> vector<8x128xf32>
    %84 = arith.truncf %83 : vector<8x128xf32> to vector<8x128xbf16>
    %c0_48 = arith.constant 0 : index
    %c0_49 = arith.constant 0 : index
    %c0_50 = arith.constant 0 : index
    %85 = vector.load %arg3[%c0_48, %c0_49, %c0_50] : memref<4x128x64xbf16, #tpu.memory_space<vmem>>, vector<1x128x64xbf16>
    %86 = vector.shape_cast %85 : vector<1x128x64xbf16> to vector<128x64xbf16>
    %cst_51 = arith.constant dense<0.000000e+00> : vector<8x64xf32>
    %87 = tpu.matmul %84, %86, %cst_51 {dimension_numbers = #tpu.dot_dimension_numbers<[1], [0], [0], [1], [0, 0, 1, 1], [], []>} : vector<8x128xbf16>, vector<128x64xbf16>, vector<8x64xf32> -> vector<8x64xf32>
    %88 = arith.addf %87, %4 : vector<8x64xf32>
    %89 = math.tanh %88 : vector<8x64xf32>
    %90 = tpu.concatenate %62, %69 in 1 : vector<8x64xf32>, vector<8x64xf32> -> vector<8x128xf32>
    %91 = arith.truncf %90 : vector<8x128xf32> to vector<8x128xbf16>
    %c1_52 = arith.constant 1 : index
    %c0_53 = arith.constant 0 : index
    %c0_54 = arith.constant 0 : index
    %92 = vector.load %arg3[%c1_52, %c0_53, %c0_54] : memref<4x128x64xbf16, #tpu.memory_space<vmem>>, vector<1x128x64xbf16>
    %93 = vector.shape_cast %92 : vector<1x128x64xbf16> to vector<128x64xbf16>
    %cst_55 = arith.constant dense<0.000000e+00> : vector<8x64xf32>
    %94 = tpu.matmul %91, %93, %cst_55 {dimension_numbers = #tpu.dot_dimension_numbers<[1], [0], [0], [1], [0, 0, 1, 1], [], []>} : vector<8x128xbf16>, vector<128x64xbf16>, vector<8x64xf32> -> vector<8x64xf32>
    %95 = arith.addf %94, %7 : vector<8x64xf32>
    %96 = math.tanh %95 : vector<8x64xf32>
    %97 = tpu.concatenate %69, %76 in 1 : vector<8x64xf32>, vector<8x64xf32> -> vector<8x128xf32>
    %98 = arith.truncf %97 : vector<8x128xf32> to vector<8x128xbf16>
    %c2_56 = arith.constant 2 : index
    %c0_57 = arith.constant 0 : index
    %c0_58 = arith.constant 0 : index
    %99 = vector.load %arg3[%c2_56, %c0_57, %c0_58] : memref<4x128x64xbf16, #tpu.memory_space<vmem>>, vector<1x128x64xbf16>
    %100 = vector.shape_cast %99 : vector<1x128x64xbf16> to vector<128x64xbf16>
    %cst_59 = arith.constant dense<0.000000e+00> : vector<8x64xf32>
    %101 = tpu.matmul %98, %100, %cst_59 {dimension_numbers = #tpu.dot_dimension_numbers<[1], [0], [0], [1], [0, 0, 1, 1], [], []>} : vector<8x128xbf16>, vector<128x64xbf16>, vector<8x64xf32> -> vector<8x64xf32>
    %102 = arith.addf %101, %10 : vector<8x64xf32>
    %103 = math.tanh %102 : vector<8x64xf32>
    %104 = tpu.concatenate %76, %1 in 1 : vector<8x64xf32>, vector<8x64xf32> -> vector<8x128xf32>
    %105 = arith.truncf %104 : vector<8x128xf32> to vector<8x128xbf16>
    %c3_60 = arith.constant 3 : index
    %c0_61 = arith.constant 0 : index
    %c0_62 = arith.constant 0 : index
    %106 = vector.load %arg3[%c3_60, %c0_61, %c0_62] : memref<4x128x64xbf16, #tpu.memory_space<vmem>>, vector<1x128x64xbf16>
    %107 = vector.shape_cast %106 : vector<1x128x64xbf16> to vector<128x64xbf16>
    %cst_63 = arith.constant dense<0.000000e+00> : vector<8x64xf32>
    %108 = tpu.matmul %105, %107, %cst_63 {dimension_numbers = #tpu.dot_dimension_numbers<[1], [0], [0], [1], [0, 0, 1, 1], [], []>} : vector<8x128xbf16>, vector<128x64xbf16>, vector<8x64xf32> -> vector<8x64xf32>
    %109 = arith.addf %108, %13 : vector<8x64xf32>
    %110 = math.tanh %109 : vector<8x64xf32>
    %111 = arith.truncf %110 : vector<8x64xf32> to vector<8x64xbf16>
    %c0_64 = arith.constant 0 : index
    %c0_65 = arith.constant 0 : index
    %112 = vector.load %arg10[%c0_64, %c0_65] : memref<8x320xbf16, #tpu.memory_space<vmem>>, vector<8x64xbf16>
    tpu.vector_store %arg10[%c0_64, %c0_65], %111 {strides = array<i32>} : memref<8x320xbf16, #tpu.memory_space<vmem>>, vector<8x64xbf16>,
    %113 = tpu.concatenate %82, %89 in 1 : vector<8x64xf32>, vector<8x64xf32> -> vector<8x128xf32>
    %114 = arith.truncf %113 : vector<8x128xf32> to vector<8x128xbf16>
    %c0_66 = arith.constant 0 : index
    %c0_67 = arith.constant 0 : index
    %c0_68 = arith.constant 0 : index
    %115 = vector.load %arg3[%c0_66, %c0_67, %c0_68] : memref<4x128x64xbf16, #tpu.memory_space<vmem>>, vector<1x128x64xbf16>
    %116 = vector.shape_cast %115 : vector<1x128x64xbf16> to vector<128x64xbf16>
    %cst_69 = arith.constant dense<0.000000e+00> : vector<8x64xf32>
    %117 = tpu.matmul %114, %116, %cst_69 {dimension_numbers = #tpu.dot_dimension_numbers<[1], [0], [0], [1], [0, 0, 1, 1], [], []>} : vector<8x128xbf16>, vector<128x64xbf16>, vector<8x64xf32> -> vector<8x64xf32>
    %118 = arith.addf %117, %4 : vector<8x64xf32>
    %119 = math.tanh %118 : vector<8x64xf32>
    %120 = tpu.concatenate %89, %96 in 1 : vector<8x64xf32>, vector<8x64xf32> -> vector<8x128xf32>
    %121 = arith.truncf %120 : vector<8x128xf32> to vector<8x128xbf16>
    %c1_70 = arith.constant 1 : index
    %c0_71 = arith.constant 0 : index
    %c0_72 = arith.constant 0 : index
    %122 = vector.load %arg3[%c1_70, %c0_71, %c0_72] : memref<4x128x64xbf16, #tpu.memory_space<vmem>>, vector<1x128x64xbf16>
    %123 = vector.shape_cast %122 : vector<1x128x64xbf16> to vector<128x64xbf16>
    %cst_73 = arith.constant dense<0.000000e+00> : vector<8x64xf32>
    %124 = tpu.matmul %121, %123, %cst_73 {dimension_numbers = #tpu.dot_dimension_numbers<[1], [0], [0], [1], [0, 0, 1, 1], [], []>} : vector<8x128xbf16>, vector<128x64xbf16>, vector<8x64xf32> -> vector<8x64xf32>
    %125 = arith.addf %124, %7 : vector<8x64xf32>
    %126 = math.tanh %125 : vector<8x64xf32>
    %127 = tpu.concatenate %96, %103 in 1 : vector<8x64xf32>, vector<8x64xf32> -> vector<8x128xf32>
    %128 = arith.truncf %127 : vector<8x128xf32> to vector<8x128xbf16>
    %c2_74 = arith.constant 2 : index
    %c0_75 = arith.constant 0 : index
    %c0_76 = arith.constant 0 : index
    %129 = vector.load %arg3[%c2_74, %c0_75, %c0_76] : memref<4x128x64xbf16, #tpu.memory_space<vmem>>, vector<1x128x64xbf16>
    %130 = vector.shape_cast %129 : vector<1x128x64xbf16> to vector<128x64xbf16>
    %cst_77 = arith.constant dense<0.000000e+00> : vector<8x64xf32>
    %131 = tpu.matmul %128, %130, %cst_77 {dimension_numbers = #tpu.dot_dimension_numbers<[1], [0], [0], [1], [0, 0, 1, 1], [], []>} : vector<8x128xbf16>, vector<128x64xbf16>, vector<8x64xf32> -> vector<8x64xf32>
    %132 = arith.addf %131, %10 : vector<8x64xf32>
    %133 = math.tanh %132 : vector<8x64xf32>
    %134 = tpu.concatenate %103, %110 in 1 : vector<8x64xf32>, vector<8x64xf32> -> vector<8x128xf32>
    %135 = arith.truncf %134 : vector<8x128xf32> to vector<8x128xbf16>
    %c3_78 = arith.constant 3 : index
    %c0_79 = arith.constant 0 : index
    %c0_80 = arith.constant 0 : index
    %136 = vector.load %arg3[%c3_78, %c0_79, %c0_80] : memref<4x128x64xbf16, #tpu.memory_space<vmem>>, vector<1x128x64xbf16>
    %137 = vector.shape_cast %136 : vector<1x128x64xbf16> to vector<128x64xbf16>
    %cst_81 = arith.constant dense<0.000000e+00> : vector<8x64xf32>
    %138 = tpu.matmul %135, %137, %cst_81 {dimension_numbers = #tpu.dot_dimension_numbers<[1], [0], [0], [1], [0, 0, 1, 1], [], []>} : vector<8x128xbf16>, vector<128x64xbf16>, vector<8x64xf32> -> vector<8x64xf32>
    %139 = arith.addf %138, %13 : vector<8x64xf32>
    %140 = math.tanh %139 : vector<8x64xf32>
    %141 = arith.truncf %140 : vector<8x64xf32> to vector<8x64xbf16>
    %c0_82 = arith.constant 0 : index
    %c64 = arith.constant 64 : index
    %142 = vector.load %arg10[%c0_82, %c64] : memref<8x320xbf16, #tpu.memory_space<vmem>>, vector<8x64xbf16>
    tpu.vector_store %arg10[%c0_82, %c64], %141 {strides = array<i32>} : memref<8x320xbf16, #tpu.memory_space<vmem>>, vector<8x64xbf16>,
    %143 = tpu.concatenate %119, %126 in 1 : vector<8x64xf32>, vector<8x64xf32> -> vector<8x128xf32>
    %144 = arith.truncf %143 : vector<8x128xf32> to vector<8x128xbf16>
    %c1_83 = arith.constant 1 : index
    %c0_84 = arith.constant 0 : index
    %c0_85 = arith.constant 0 : index
    %145 = vector.load %arg3[%c1_83, %c0_84, %c0_85] : memref<4x128x64xbf16, #tpu.memory_space<vmem>>, vector<1x128x64xbf16>
    %146 = vector.shape_cast %145 : vector<1x128x64xbf16> to vector<128x64xbf16>
    %cst_86 = arith.constant dense<0.000000e+00> : vector<8x64xf32>
    %147 = tpu.matmul %144, %146, %cst_86 {dimension_numbers = #tpu.dot_dimension_numbers<[1], [0], [0], [1], [0, 0, 1, 1], [], []>} : vector<8x128xbf16>, vector<128x64xbf16>, vector<8x64xf32> -> vector<8x64xf32>
    %148 = arith.addf %147, %7 : vector<8x64xf32>
    %149 = math.tanh %148 : vector<8x64xf32>
    %150 = tpu.concatenate %126, %133 in 1 : vector<8x64xf32>, vector<8x64xf32> -> vector<8x128xf32>
    %151 = arith.truncf %150 : vector<8x128xf32> to vector<8x128xbf16>
    %c2_87 = arith.constant 2 : index
    %c0_88 = arith.constant 0 : index
    %c0_89 = arith.constant 0 : index
    %152 = vector.load %arg3[%c2_87, %c0_88, %c0_89] : memref<4x128x64xbf16, #tpu.memory_space<vmem>>, vector<1x128x64xbf16>
    %153 = vector.shape_cast %152 : vector<1x128x64xbf16> to vector<128x64xbf16>
    %cst_90 = arith.constant dense<0.000000e+00> : vector<8x64xf32>
    %154 = tpu.matmul %151, %153, %cst_90 {dimension_numbers = #tpu.dot_dimension_numbers<[1], [0], [0], [1], [0, 0, 1, 1], [], []>} : vector<8x128xbf16>, vector<128x64xbf16>, vector<8x64xf32> -> vector<8x64xf32>
    %155 = arith.addf %154, %10 : vector<8x64xf32>
    %156 = math.tanh %155 : vector<8x64xf32>
    %157 = tpu.concatenate %133, %140 in 1 : vector<8x64xf32>, vector<8x64xf32> -> vector<8x128xf32>
    %158 = arith.truncf %157 : vector<8x128xf32> to vector<8x128xbf16>
    %c3_91 = arith.constant 3 : index
    %c0_92 = arith.constant 0 : index
    %c0_93 = arith.constant 0 : index
    %159 = vector.load %arg3[%c3_91, %c0_92, %c0_93] : memref<4x128x64xbf16, #tpu.memory_space<vmem>>, vector<1x128x64xbf16>
    %160 = vector.shape_cast %159 : vector<1x128x64xbf16> to vector<128x64xbf16>
    %cst_94 = arith.constant dense<0.000000e+00> : vector<8x64xf32>
    %161 = tpu.matmul %158, %160, %cst_94 {dimension_numbers = #tpu.dot_dimension_numbers<[1], [0], [0], [1], [0, 0, 1, 1], [], []>} : vector<8x128xbf16>, vector<128x64xbf16>, vector<8x64xf32> -> vector<8x64xf32>
    %162 = arith.addf %161, %13 : vector<8x64xf32>
    %163 = math.tanh %162 : vector<8x64xf32>
    %164 = arith.truncf %163 : vector<8x64xf32> to vector<8x64xbf16>
    %c0_95 = arith.constant 0 : index
    %c128 = arith.constant 128 : index
    %165 = vector.load %arg10[%c0_95, %c128] : memref<8x320xbf16, #tpu.memory_space<vmem>>, vector<8x64xbf16>
    tpu.vector_store %arg10[%c0_95, %c128], %164 {strides = array<i32>} : memref<8x320xbf16, #tpu.memory_space<vmem>>, vector<8x64xbf16>,
    %166 = tpu.concatenate %149, %156 in 1 : vector<8x64xf32>, vector<8x64xf32> -> vector<8x128xf32>
    %167 = arith.truncf %166 : vector<8x128xf32> to vector<8x128xbf16>
    %c2_96 = arith.constant 2 : index
    %c0_97 = arith.constant 0 : index
    %c0_98 = arith.constant 0 : index
    %168 = vector.load %arg3[%c2_96, %c0_97, %c0_98] : memref<4x128x64xbf16, #tpu.memory_space<vmem>>, vector<1x128x64xbf16>
    %169 = vector.shape_cast %168 : vector<1x128x64xbf16> to vector<128x64xbf16>
    %cst_99 = arith.constant dense<0.000000e+00> : vector<8x64xf32>
    %170 = tpu.matmul %167, %169, %cst_99 {dimension_numbers = #tpu.dot_dimension_numbers<[1], [0], [0], [1], [0, 0, 1, 1], [], []>} : vector<8x128xbf16>, vector<128x64xbf16>, vector<8x64xf32> -> vector<8x64xf32>
    %171 = arith.addf %170, %10 : vector<8x64xf32>
    %172 = math.tanh %171 : vector<8x64xf32>
    %173 = tpu.concatenate %156, %163 in 1 : vector<8x64xf32>, vector<8x64xf32> -> vector<8x128xf32>
    %174 = arith.truncf %173 : vector<8x128xf32> to vector<8x128xbf16>
    %c3_100 = arith.constant 3 : index
    %c0_101 = arith.constant 0 : index
    %c0_102 = arith.constant 0 : index
    %175 = vector.load %arg3[%c3_100, %c0_101, %c0_102] : memref<4x128x64xbf16, #tpu.memory_space<vmem>>, vector<1x128x64xbf16>
    %176 = vector.shape_cast %175 : vector<1x128x64xbf16> to vector<128x64xbf16>
    %cst_103 = arith.constant dense<0.000000e+00> : vector<8x64xf32>
    %177 = tpu.matmul %174, %176, %cst_103 {dimension_numbers = #tpu.dot_dimension_numbers<[1], [0], [0], [1], [0, 0, 1, 1], [], []>} : vector<8x128xbf16>, vector<128x64xbf16>, vector<8x64xf32> -> vector<8x64xf32>
    %178 = arith.addf %177, %13 : vector<8x64xf32>
    %179 = math.tanh %178 : vector<8x64xf32>
    %180 = arith.truncf %179 : vector<8x64xf32> to vector<8x64xbf16>
    %c0_104 = arith.constant 0 : index
    %c192 = arith.constant 192 : index
    %181 = vector.load %arg10[%c0_104, %c192] : memref<8x320xbf16, #tpu.memory_space<vmem>>, vector<8x64xbf16>
    tpu.vector_store %arg10[%c0_104, %c192], %180 {strides = array<i32>} : memref<8x320xbf16, #tpu.memory_space<vmem>>, vector<8x64xbf16>,
    %182 = tpu.concatenate %172, %179 in 1 : vector<8x64xf32>, vector<8x64xf32> -> vector<8x128xf32>
    %183 = arith.truncf %182 : vector<8x128xf32> to vector<8x128xbf16>
    %c3_105 = arith.constant 3 : index
    %c0_106 = arith.constant 0 : index
    %c0_107 = arith.constant 0 : index
    %184 = vector.load %arg3[%c3_105, %c0_106, %c0_107] : memref<4x128x64xbf16, #tpu.memory_space<vmem>>, vector<1x128x64xbf16>
    %185 = vector.shape_cast %184 : vector<1x128x64xbf16> to vector<128x64xbf16>
    %cst_108 = arith.constant dense<0.000000e+00> : vector<8x64xf32>
    %186 = tpu.matmul %183, %185, %cst_108 {dimension_numbers = #tpu.dot_dimension_numbers<[1], [0], [0], [1], [0, 0, 1, 1], [], []>} : vector<8x128xbf16>, vector<128x64xbf16>, vector<8x64xf32> -> vector<8x64xf32>
    %187 = arith.addf %186, %13 : vector<8x64xf32>
    %188 = math.tanh %187 : vector<8x64xf32>
    %189 = arith.truncf %188 : vector<8x64xf32> to vector<8x64xbf16>
    %c0_109 = arith.constant 0 : index
    %c256 = arith.constant 256 : index
    %190 = vector.load %arg10[%c0_109, %c256] : memref<8x320xbf16, #tpu.memory_space<vmem>>, vector<8x64xbf16>
    tpu.vector_store %arg10[%c0_109, %c256], %189 {strides = array<i32>} : memref<8x320xbf16, #tpu.memory_space<vmem>>, vector<8x64xbf16>,
    %c0_110 = arith.constant 0 : index
    %c0_111 = arith.constant 0 : index
    %191 = vector.load %arg10[%c0_110, %c0_111] : memref<8x320xbf16, #tpu.memory_space<vmem>>, vector<8x320xbf16>
    %c0_112 = arith.constant 0 : index
    %c0_113 = arith.constant 0 : index
    %192 = vector.load %arg5[%c0_112, %c0_113] : memref<320x320xbf16, #tpu.memory_space<vmem>>, vector<320x320xbf16>
    %cst_114 = arith.constant dense<0.000000e+00> : vector<8x320xf32>
    %193 = tpu.matmul %191, %192, %cst_114 {dimension_numbers = #tpu.dot_dimension_numbers<[1], [0], [0], [1], [0, 0, 1, 1], [], []>} : vector<8x320xbf16>, vector<320x320xbf16>, vector<8x320xf32> -> vector<8x320xf32>
    %c0_115 = arith.constant 0 : index
    %c0_116 = arith.constant 0 : index
    %194 = vector.load %arg6[%c0_115, %c0_116] : memref<1x320xf32, #tpu.memory_space<vmem>>, vector<1x320xf32>
    %195 = vector.broadcast %194 : vector<1x320xf32> to vector<8x320xf32>
    %196 = arith.addf %193, %195 : vector<8x320xf32>
    %c0_117 = arith.constant 0 : index
    %c0_118 = arith.constant 0 : index
    %197 = vector.load %arg7[%c0_117, %c0_118] : memref<1x320xf32, #tpu.memory_space<vmem>>, vector<1x320xf32>
    %198 = vector.broadcast %197 : vector<1x320xf32> to vector<8x320xf32>
    %199 = arith.mulf %196, %198 : vector<8x320xf32>
    %cst_119 = arith.constant dense<0.000000e+00> : vector<8xf32>
    %200 = vector.multi_reduction <add>, %199, %cst_119 [1] : vector<8x320xf32> to vector<8xf32>
    %201 = vector.shape_cast %200 : vector<8xf32> to vector<8x1xf32>
    %c0_120 = arith.constant 0 : index
    %c0_121 = arith.constant 0 : index
    %202 = memref.load %arg8[%c0_120, %c0_121] : memref<1x1xf32, #tpu.memory_space<smem>>
    %203 = vector.broadcast %202 : f32 to vector<8x1xf32>
    %204 = arith.addf %201, %203 : vector<8x1xf32>
    %c0_122 = arith.constant 0 : index
    %c0_123 = arith.constant 0 : index
    %205 = vector.load %arg9[%c0_122, %c0_123] : memref<8x1xf32, #tpu.memory_space<vmem>>, vector<8x1xf32>
    tpu.vector_store %arg9[%c0_122, %c0_123], %204 {strides = array<i32>} : memref<8x1xf32, #tpu.memory_space<vmem>>, vector<8x1xf32>,
    return
  }
  func.func @transform_0(%arg0: i32) -> (i32, i32, i32) {
    %c0_i32 = arith.constant 0 : i32
    %c0_i32_0 = arith.constant 0 : i32
    %c0_i32_1 = arith.constant 0 : i32
    return %c0_i32, %arg0, %c0_i32_0 : i32, i32, i32
  }
  func.func @transform_1(%arg0: i32) -> (i32, i32) {
    %c0_i32 = arith.constant 0 : i32
    %c0_i32_0 = arith.constant 0 : i32
    %c0_i32_1 = arith.constant 0 : i32
    return %c0_i32, %c0_i32_0 : i32, i32
  }
  func.func @transform_2(%arg0: i32) -> (i32, i32, i32) {
    %c0_i32 = arith.constant 0 : i32
    %c0_i32_0 = arith.constant 0 : i32
    %c0_i32_1 = arith.constant 0 : i32
    %c0_i32_2 = arith.constant 0 : i32
    return %c0_i32, %c0_i32_0, %c0_i32_1 : i32, i32, i32
  }
  func.func @transform_3(%arg0: i32) -> (i32, i32) {
    %c0_i32 = arith.constant 0 : i32
    %c0_i32_0 = arith.constant 0 : i32
    %c0_i32_1 = arith.constant 0 : i32
    return %c0_i32, %c0_i32_0 : i32, i32
  }
  func.func @transform_4(%arg0: i32) -> (i32, i32) {
    %c0_i32 = arith.constant 0 : i32
    %c0_i32_0 = arith.constant 0 : i32
    %c0_i32_1 = arith.constant 0 : i32
    return %c0_i32, %c0_i32_0 : i32, i32
  }
  func.func @transform_5(%arg0: i32) -> (i32, i32) {
    %c0_i32 = arith.constant 0 : i32
    %c0_i32_0 = arith.constant 0 : i32
    %c0_i32_1 = arith.constant 0 : i32
    return %c0_i32, %c0_i32_0 : i32, i32
  }
  func.func @transform_6(%arg0: i32) -> (i32, i32) {
    %c0_i32 = arith.constant 0 : i32
    %c0_i32_0 = arith.constant 0 : i32
    %c0_i32_1 = arith.constant 0 : i32
    return %c0_i32, %c0_i32_0 : i32, i32
  }
  func.func @transform_7(%arg0: i32) -> (i32, i32) {
    %c0_i32 = arith.constant 0 : i32
    %c0_i32_0 = arith.constant 0 : i32
    %c0_i32_1 = arith.constant 0 : i32
    return %c0_i32, %c0_i32_0 : i32, i32
  }
  func.func @transform_8(%arg0: i32) -> (i32, i32) {
    %c0_i32 = arith.constant 0 : i32
    %c0_i32_0 = arith.constant 0 : i32
    return %arg0, %c0_i32 : i32, i32
  }
}

</mosaic_0001>

<bundles_post_ra>
// kernel: tpu_custom_call.1
= control target key start
LH: loop header
LB: loop body
LE: loop exit
PB: predicated region body
PF: predicated region fallthrough
CT: control target
= control target key end

     0   :  { %14 = vsyncpa [#allocation5], 0  ;;  %s3223_s30 = smov [#allocation4]   ;;  %s3224_s10 = smov 192   ;;  %s3874_s0 = inlined_call_operand.vmem [shape: f32[5,8,64], index: 0, kind: input, shape index: {}]   ;;  %s3875_s1 = inlined_call_operand.vmem [shape: bf16[64,64], index: 1, kind: input, shape index: {}]   ;;  %s3876_s2 = inlined_call_operand.vmem [shape: bf16[4,128,64], index: 2, kind: input, shape index: {}]   ;;  %s3877_s3 = inlined_call_operand.vmem [shape: f32[5,64], index: 3, kind: input, shape index: {}]   ;;  %s3878_s4 = inlined_call_operand.hbm [shape: bf16[320,320], index: 4, kind: input, shape index: {}]   ;;  %s3879_s5 = inlined_call_operand.vmem [shape: f32[1,320], index: 5, kind: input, shape index: {}]   ;;  %s3880_s6 = inlined_call_operand.vmem [shape: f32[1,320], index: 6, kind: input, shape index: {}]   ;;  %s3881_s7 = inlined_call_operand.<no memory space> [shape: f32[1,1], index: 7, kind: input, shape index: {}]   ;;  %s3882_s8 = inlined_call_operand.vmem [shape: f32[8,1], index: 8, kind: output, shape index: {}]  }
   0x1   :  { %s27_s29 = sshll.u32 %s3878_s4, 4  ;;  %s29_s9 = sshll.u32 %s3223_s30, 4  ;;  %s28_s29 = int_to_ptr.hbm [resolvable:$true] %s27_s29  ;;  %s30_s9 = int_to_ptr.vmem [resolvable:$true] %s29_s9 }
   0x2   :  { %s3225_s11 = smov 12  }
   0x3   :  { %35 = dma.hbm_to_vmem [thread:$0]  %s28_s29, 7680, %s30_s9, [#allocation5], %s3224_s10, %s3224_s10, %s3225_s11  }
   0x4   :  { %3221 = dma.done.wait [#allocation5], 7680  }
   0x5   :  { %3222 = vsyncadd [#allocation5], 4294959616  ;;  %v3278_v0 = vld [vmem:[%s3876_s2 + $0x38] sm:$0xff]  ;;  %v3284_v1 = vld [vmem:[%s3876_s2 + $0x30] sm:$0xff]  ;;  %vm92_vm0 = vcmask 523264   ;;  %s3226_s14 = smov 64  }
   0x6   :  { %177 = vmatpush.bf16.msra.mxu1 %v3278_v0  ;;  %218 = vmatpush.bf16.msra.mxu3 %v3278_v0  ;;  %v3290_v2 = vld [vmem:[%s3875_s1 + $0x18] sm:$0xff]  ;;  %v3295_v3 = vld [vmem:[%s3876_s2 + $0x28] sm:$0xff]  ;;  %v3301_v4 = vld [vmem:[%s3875_s1 + $0x10] sm:$0xff]  ;;  %vm618_vm2 = vcmask 519168   ;;  %vm961_vm3 = vcmask 1043968   ;;  %vm2036_vm4 = vcmask 7168  }
   0x7   :  { %100 = vmatpush.bf16.msra.mxu0 %v3290_v2  ;;  %201 = vmatpush.bf16.msra.mxu2 %v3290_v2  ;;  %v63_v5 = vld [vmem:[%s3874_s0] sm:$0xff]  ;;  %v3313_v6 = vld [vmem:[%s3875_s1 + $0x8] sm:$0xff]  ;;  %v3334_v9 = vld [vmem:[%s3876_s2 + $0x18] sm:$0xff] }
   0x8   :  { %3146 = vtanh.f32 %v63_v5  ;;  %v3320_v7 = vld [vmem:[%s3876_s2 + $0x20] sm:$0xff]  ;;  %v3339_v10 = vld [vmem:[%s3876_s2 + $0x78] sm:$0xff]  ;;  %v3348_v12 = vld [vmem:[%s3876_s2 + $0x10] sm:$0xff] }
   0x9   :  { %v3327_v8 = vld [vmem:[%s3875_s1] sm:$0xff]  ;;  %v3354_v14 = vld [vmem:[%s3876_s2 + $0x70] sm:$0xff]  ;;  %v3363_v15 = vld [vmem:[%s3876_s2 + $0x8] sm:$0xff] }
   0xa   :  { %178 = vmatpush.bf16.msra.mxu1 %v3284_v1  ;;  %219 = vmatpush.bf16.msra.mxu3 %v3284_v1  ;;  %v2979_v16 = vld [vmem:[%s3876_s2 + $0x68] sm:$0xff]  ;;  %v3375_v17 = vld [vmem:[%s3876_s2] sm:$0xff]  ;;  %vm3385_vm1 = vmpackc.low %vm92_vm0, %vm92_vm0 }
   0xb   :  { %101 = vmatpush.bf16.msra.mxu0 %v3301_v4  ;;  %202 = vmatpush.bf16.msra.mxu2 %v3301_v4  ;;  %v2978_v18 = vld [vmem:[%s3876_s2 + $0x60] sm:$0xff]  ;;  %v2977_v20 = vld [vmem:[%s3876_s2 + $0x58] sm:$0xff]  ;;  %v2976_v21 = vld [vmem:[%s3876_s2 + $0x50] sm:$0xff] }
   0xc   :  { %v2975_v22 = vld [vmem:[%s3876_s2 + $0x48] sm:$0xff]  ;;  %v2974_v23 = vld [vmem:[%s3876_s2 + $0x40] sm:$0xff]  ;;  %v3419_v24 = vld [vmem:[%s3876_s2 + $0xb8] sm:$0xff] }
   0xd   :  { %v3425_v25 = vld [vmem:[%s3876_s2 + $0xb0] sm:$0xff]  ;;  %v2043_v26 = vld [vmem:[%s3874_s0 + $0x8] sm:$0xff]  ;;  %v3437_v31 = vld [vmem:[%s3877_s3 + $0x1] ss:$0 sm:$0xff] }
   0xe   :  { %179 = vmatpush.bf16.msra.mxu1 %v3295_v3  ;;  %220 = vmatpush.bf16.msra.mxu3 %v3295_v3  ;;  %v3147_v11 = vpop.eup %3146  ;;  %v2987_v38 = vld [vmem:[%s3876_s2 + $0xa8] sm:$0xff]  ;;  %v2986_v39 = vld [vmem:[%s3876_s2 + $0xa0] sm:$0xff]  ;;  %v2985_v40 = vld [vmem:[%s3876_s2 + $0x98] sm:$0xff] }
   0xf   :  { %102 = vmatpush.bf16.msra.mxu0 %v3313_v6  ;;  %203 = vmatpush.bf16.msra.mxu2 %v3313_v6  ;;  %v67_v13 = vpack.c.bf16 %v3147_v11, %v3147_v11  ;;  %v2984_v41 = vld [vmem:[%s3876_s2 + $0x90] sm:$0xff]  ;;  %v2983_v42 = vld [vmem:[%s3876_s2 + $0x88] sm:$0xff]  ;;  %v2982_v43 = vld [vmem:[%s3876_s2 + $0x80] sm:$0xff] }
  0x10   :  { %v2096_v47 = vld [vmem:[%s3874_s0 + $0x10] sm:$0xff]  ;;  %v3479_v50 = vld [vmem:[%s3877_s3 + $0x2] ss:$0 sm:$0xff]  ;;  %v2997_v59 = vld [vmem:[%s3876_s2 + $0xf8] sm:$0xff] }
  0x11   :  { %v2996_v60 = vld [vmem:[%s3876_s2 + $0xf0] sm:$0xff]  ;;  %v2995_v61 = vld [vmem:[%s3876_s2 + $0xe8] sm:$0xff]  ;;  %v2994_v62 = vld [vmem:[%s3876_s2 + $0xe0] sm:$0xff] }
  0x12   :  { %180 = vmatpush.bf16.msra.mxu1 %v3320_v7  ;;  %221 = vmatpush.bf16.msra.mxu3 %v3320_v7  ;;  %v2993_v63 = vld [vmem:[%s3876_s2 + $0xd8] sm:$0xff]  ;;  %v3539_v19 = vld [vmem:[%s3877_s3 + $0x4] ss:$0 sm:$0xff] }
  0x13   :  { %103 = vmatpush.bf16.msra.mxu0 %v3327_v8  ;;  %204 = vmatpush.bf16.msra.mxu2 %v3327_v8 }
  0x16   :  { %181 = vmatpush.bf16.msra.mxu1 %v3334_v9  ;;  %222 = vmatpush.bf16.msra.mxu3 %v3334_v9 }
  0x17   :  { %299 = vmatpush.bf16.msrb.mxu0 %v3339_v10  ;;  %323 = vmatpush.bf16.msrb.mxu2 %v3290_v2 }
  0x18   :  { %2060 = vmatmul.msk.bf16.vlgmr.msra.gmra.mxu0 %vm92_vm0, %v67_v13 }
  0x1a   :  { %182 = vmatpush.bf16.msra.mxu1 %v3348_v12  ;;  %223 = vmatpush.bf16.msra.mxu3 %v3348_v12 }
  0x1b   :  { %300 = vmatpush.bf16.msrb.mxu0 %v3354_v14  ;;  %324 = vmatpush.bf16.msrb.mxu2 %v3301_v4 }
  0x1e   :  { %183 = vmatpush.bf16.msra.mxu1 %v3363_v15  ;;  %224 = vmatpush.bf16.msra.mxu3 %v3363_v15 }
  0x1f   :  { %301 = vmatpush.bf16.msrb.mxu0 %v2979_v16  ;;  %325 = vmatpush.bf16.msrb.mxu2 %v3313_v6 }
  0x22   :  { %184 = vmatpush.bf16.msra.mxu1 %v3375_v17  ;;  %225 = vmatpush.bf16.msra.mxu3 %v3375_v17 }
  0x23   :  { %302 = vmatpush.bf16.msrb.mxu0 %v2978_v18  ;;  %326 = vmatpush.bf16.msrb.mxu2 %v3327_v8 }
  0x25   :  { %2095 = vmatmul.msk.bf16.vlgmr.msra.gmra.mxu1 %vm3385_vm1, %v67_v13  ;;  %v3521_v13 = vld [vmem:[%s3877_s3 + $0x3] ss:$0 sm:$0xff] }
  0x26   :  { %340 = vmatpush.bf16.msrb.mxu1 %v3278_v0  ;;  %441 = vmatpush.bf16.msrb.mxu3 %v3419_v24 }
  0x27   :  { %303 = vmatpush.bf16.msrb.mxu0 %v2977_v20 }
  0x2a   :  { %341 = vmatpush.bf16.msrb.mxu1 %v3284_v1  ;;  %442 = vmatpush.bf16.msrb.mxu3 %v3425_v25 }
  0x2b   :  { %304 = vmatpush.bf16.msrb.mxu0 %v2976_v21 }
  0x2e   :  { %342 = vmatpush.bf16.msrb.mxu1 %v3295_v3  ;;  %443 = vmatpush.bf16.msrb.mxu3 %v2987_v38 }
  0x2f   :  { %305 = vmatpush.bf16.msrb.mxu0 %v2975_v22 }
  0x32   :  { %343 = vmatpush.bf16.msrb.mxu1 %v3320_v7  ;;  %444 = vmatpush.bf16.msrb.mxu3 %v2986_v39 }
  0x33   :  { %306 = vmatpush.bf16.msrb.mxu0 %v2974_v23 }
  0x36   :  { %344 = vmatpush.bf16.msrb.mxu1 %v3334_v9  ;;  %445 = vmatpush.bf16.msrb.mxu3 %v2985_v40 }
  0x37   :  { %465 = vmatpush.bf16.msra.mxu0 %v3290_v2  ;;  %v2990_v2 = vld [vmem:[%s3876_s2 + $0xc0] sm:$0xff] }
  0x3a   :  { %345 = vmatpush.bf16.msrb.mxu1 %v3348_v12  ;;  %446 = vmatpush.bf16.msrb.mxu3 %v2984_v41 }
  0x3b   :  { %466 = vmatpush.bf16.msra.mxu0 %v3301_v4 }
  0x3e   :  { %346 = vmatpush.bf16.msrb.mxu1 %v3363_v15  ;;  %447 = vmatpush.bf16.msrb.mxu3 %v2983_v42 }
  0x3f   :  { %467 = vmatpush.bf16.msra.mxu0 %v3313_v6 }
  0x42   :  { %347 = vmatpush.bf16.msrb.mxu1 %v3375_v17  ;;  %448 = vmatpush.bf16.msrb.mxu3 %v2982_v43 }
  0x43   :  { %468 = vmatpush.bf16.msra.mxu0 %v3327_v8 }
  0x46   :  { %502 = vmatpush.bf16.msra.mxu1 %v3339_v10 }
  0x4a   :  { %503 = vmatpush.bf16.msra.mxu1 %v3354_v14 }
  0x4e   :  { %504 = vmatpush.bf16.msra.mxu1 %v2979_v16 }
  0x52   :  { %505 = vmatpush.bf16.msra.mxu1 %v2978_v18 }
  0x56   :  { %506 = vmatpush.bf16.msra.mxu1 %v2977_v20 }
  0x5a   :  { %507 = vmatpush.bf16.msra.mxu1 %v2976_v21 }
  0x5e   :  { %508 = vmatpush.bf16.msra.mxu1 %v2975_v22 }
  0x62   :  { %509 = vmatpush.bf16.msra.mxu1 %v2974_v23 }
  0x95   :  { %v105_v27 = vpop.f32.mrf.mxu0 }
  0x96   :  { %v109_v28 = vadd.f32 %v2043_v26, %v105_v27 }
  0x98   :  { %3148 = vtanh.f32 %v109_v28 }
  0x9d   :  { %v107_v29 = vpop.f32.mrf.mxu0 }
  0x9e   :  { %v3149_v30 = vpop.eup %3148 }
  0x9f   :  { %v193_v32 = vpack.c.bf16 %v3149_v30, %v3149_v30 }
  0xa1   :  { %2097 = vmatmul.msk.bf16.vlgmr.msra.gmra.mxu2 %vm92_vm0, %v193_v32 }
  0xa2   :  { %v186_v33 = vpop.f32.mrf.mxu1  ;;  %360 = vmatpush.bf16.msra.mxu2 %v3339_v10  ;;  %v2149_v10 = vld [vmem:[%s3874_s0 + $0x18] sm:$0xff] }
  0xa3   :  { %v187_v34 = vadd.f32 %v3437_v31, %v186_v33 }
  0xa5   :  { %3150 = vtanh.f32 %v187_v34 }
  0xa6   :  { %361 = vmatpush.bf16.msra.mxu2 %v3354_v14 }
  0xaa   :  { %v188_v35 = vpop.f32.mrf.mxu1  ;;  %362 = vmatpush.bf16.msra.mxu2 %v2979_v16 }
  0xab   :  { %v3151_v36 = vpop.eup %3150 }
  0xac   :  { %213 = vrot.lane.b32.xlu0 %v3151_v36, %s3226_s14  ;;  %v2147_v37 = vpack.c.bf16 %v3151_v36, %v3151_v36 }
  0xae   :  { %2148 = vmatmul.msk.bf16.vlgmr.msrb.gmra.mxu0 %vm3385_vm1, %v2147_v37  ;;  %363 = vmatpush.bf16.msra.mxu2 %v2978_v18 }
  0xaf   :  { %482 = vmatpush.bf16.msrb.mxu0 %v3278_v0  ;;  %v2992_v0 = vld [vmem:[%s3876_s2 + $0xd0] sm:$0xff] }
  0xb2   :  { %364 = vmatpush.bf16.msra.mxu2 %v2977_v20 }
  0xb3   :  { %483 = vmatpush.bf16.msrb.mxu0 %v3284_v1  ;;  %v2991_v1 = vld [vmem:[%s3876_s2 + $0xc8] sm:$0xff] }
  0xb6   :  { %365 = vmatpush.bf16.msra.mxu2 %v2976_v21 }
  0xb7   :  { %484 = vmatpush.bf16.msrb.mxu0 %v3295_v3 }
  0xba   :  { %366 = vmatpush.bf16.msra.mxu2 %v2975_v22 }
  0xbb   :  { %485 = vmatpush.bf16.msrb.mxu0 %v3320_v7 }
  0xbe   :  { %367 = vmatpush.bf16.msra.mxu2 %v2974_v23 }
  0xbf   :  { %486 = vmatpush.bf16.msrb.mxu0 %v3334_v9 }
  0xc3   :  { %487 = vmatpush.bf16.msrb.mxu0 %v3348_v12 }
  0xc7   :  { %488 = vmatpush.bf16.msrb.mxu0 %v3363_v15 }
  0xcb   :  { %489 = vmatpush.bf16.msrb.mxu0 %v3375_v17 }
 0x11e   :  { %v214_v44 = vpop.permute.xlu0 %213 }
 0x11f   :  { %v216_v45 = vsel %vm92_vm0, %v3149_v30, %v214_v44  ;;  %v3026_v44 = vld [vmem:[%s3876_s2 + $0xe0] sm:$0xff] }
 0x120   :  { %v217_v46 = vpack.c.bf16 %v216_v45, %v216_v45  ;;  %v3025_v45 = vld [vmem:[%s3876_s2 + $0xd8] sm:$0xff] }
 0x122   :  { %226 = vmatmul.bf16.vlgmr.msra.gmra.mxu3 %v217_v46 }
 0x123   :  { %603 = vmatpush.bf16.msra.mxu3 %v2997_v59 }
 0x124   :  { %v206_v48 = vpop.f32.mrf.mxu2 }
 0x125   :  { %v210_v49 = vadd.f32 %v2096_v47, %v206_v48  ;;  %v3024_v48 = vld [vmem:[%s3876_s2 + $0xd0] sm:$0xff] }
 0x127   :  { %3152 = vtanh.f32 %v210_v49  ;;  %604 = vmatpush.bf16.msra.mxu3 %v2996_v60  ;;  %v3023_v49 = vld [vmem:[%s3876_s2 + $0xc8] sm:$0xff] }
 0x12b   :  { %v308_v51 = vpop.f32.mrf.mxu0  ;;  %605 = vmatpush.bf16.msra.mxu3 %v2995_v61 }
 0x12c   :  { %v309_v52 = vadd.f32 %v3479_v50, %v308_v51  ;;  %v208_v53 = vpop.f32.mrf.mxu2 }
 0x12d   :  { %v3153_v54 = vpop.eup %3152 }
 0x12e   :  { %3154 = vtanh.f32 %v309_v52  ;;  %v315_v55 = vpack.c.bf16 %v3153_v54, %v3153_v54 }
 0x12f   :  { %606 = vmatpush.bf16.msra.mxu3 %v2994_v62 }
 0x130   :  { %2150 = vmatmul.msk.bf16.vlgmr.msrb.gmra.mxu2 %vm92_vm0, %v315_v55 }
 0x131   :  { %522 = vmatpush.bf16.msrb.mxu2 %v3419_v24 }
 0x133   :  { %v310_v56 = vpop.f32.mrf.mxu0  ;;  %607 = vmatpush.bf16.msra.mxu3 %v2993_v63 }
 0x134   :  { %v3155_v57 = vpop.eup %3154  ;;  %v3022_v56 = vld [vmem:[%s3876_s2 + $0xc0] sm:$0xff] }
 0x135   :  { %355 = vrot.lane.b32.xlu0 %v3155_v57, %s3226_s14  ;;  %v2200_v58 = vpack.c.bf16 %v3155_v57, %v3155_v57  ;;  %523 = vmatpush.bf16.msrb.mxu2 %v3425_v25 }
 0x137   :  { %2201 = vmatmul.msk.bf16.vlgmr.msrb.gmra.mxu3 %vm3385_vm1, %v2200_v58 }
 0x138   :  { %608 = vmatpush.bf16.msra.mxu3 %v2992_v0  ;;  %v3021_v0 = vld [vmem:[%s3876_s2 + $0xb8] sm:$0xff] }
 0x139   :  { %524 = vmatpush.bf16.msrb.mxu2 %v2987_v38 }
 0x13c   :  { %609 = vmatpush.bf16.msra.mxu3 %v2991_v1  ;;  %v3020_v1 = vld [vmem:[%s3876_s2 + $0xb0] sm:$0xff] }
 0x13d   :  { %525 = vmatpush.bf16.msrb.mxu2 %v2986_v39 }
 0x140   :  { %610 = vmatpush.bf16.msra.mxu3 %v2990_v2 }
 0x141   :  { %526 = vmatpush.bf16.msrb.mxu2 %v2985_v40 }
 0x145   :  { %527 = vmatpush.bf16.msrb.mxu2 %v2984_v41  ;;  %v3029_v41 = vld [vmem:[%s3876_s2 + $0xf8] sm:$0xff] }
 0x146   :  { %942 = vmatpush.bf16.msrb.mxu3 %v3029_v41 }
 0x149   :  { %528 = vmatpush.bf16.msrb.mxu2 %v2983_v42  ;;  %v3028_v42 = vld [vmem:[%s3876_s2 + $0xf0] sm:$0xff] }
 0x14a   :  { %943 = vmatpush.bf16.msrb.mxu3 %v3028_v42 }
 0x14d   :  { %529 = vmatpush.bf16.msrb.mxu2 %v2982_v43  ;;  %v3027_v43 = vld [vmem:[%s3876_s2 + $0xe8] sm:$0xff] }
 0x14e   :  { %944 = vmatpush.bf16.msrb.mxu3 %v3027_v43 }
 0x152   :  { %945 = vmatpush.bf16.msrb.mxu3 %v3026_v44 }
 0x156   :  { %946 = vmatpush.bf16.msrb.mxu3 %v3025_v45 }
 0x15a   :  { %947 = vmatpush.bf16.msrb.mxu3 %v3024_v48  ;;  %v3046_v48 = vld [vmem:[%s3876_s2 + $0xc0] sm:$0xff] }
 0x15e   :  { %948 = vmatpush.bf16.msrb.mxu3 %v3023_v49  ;;  %v3005_v49 = vld [vmem:[%s3876_s2 + $0x38] sm:$0xff] }
 0x162   :  { %949 = vmatpush.bf16.msrb.mxu3 %v3022_v56 }
 0x1a5   :  { %v227_v3 = vpop.f32.mrf.mxu3 }
 0x1a6   :  { %v228_v4 = vadd.f32 %v3437_v31, %v227_v3 }
 0x1a7   :  { %v356_v7 = vpop.permute.xlu0 %355 }
 0x1a8   :  { %3156 = vtanh.f32 %v228_v4 }
 0x1ad   :  { %v229_v5 = vpop.f32.mrf.mxu3 }
 0x1ae   :  { %v3157_v6 = vpop.eup %3156  ;;  %v3019_v5 = vld [vmem:[%s3876_s2 + $0xa8] sm:$0xff] }
 0x1af   :  { %v358_v8 = vsel %vm92_vm0, %v3157_v6, %v356_v7  ;;  %335 = vrot.lane.b32.xlu1 %v3157_v6, %s3226_s14  ;;  %v3018_v6 = vld [vmem:[%s3876_s2 + $0xa0] sm:$0xff]  ;;  %v3017_v7 = vld [vmem:[%s3876_s2 + $0x98] sm:$0xff] }
 0x1b0   :  { %v359_v9 = vpack.c.bf16 %v358_v8, %v358_v8  ;;  %v3016_v8 = vld [vmem:[%s3876_s2 + $0x90] sm:$0xff] }
 0x1b2   :  { %368 = vmatmul.bf16.vlgmr.msra.gmra.mxu2 %v359_v9  ;;  %v3015_v9 = vld [vmem:[%s3876_s2 + $0x88] sm:$0xff] }
 0x1b3   :  { %v328_v11 = vpop.f32.mrf.mxu2  ;;  %858 = vmatpush.bf16.msra.mxu2 %v3021_v0  ;;  %v2998_v0 = vld [vmem:[%s3876_s2] sm:$0xff] }
 0x1b4   :  { %v332_v12 = vadd.f32 %v2149_v10, %v328_v11  ;;  %v3014_v10 = vld [vmem:[%s3876_s2 + $0x80] sm:$0xff] }
 0x1b6   :  { %3158 = vtanh.f32 %v332_v12 }
 0x1b7   :  { %859 = vmatpush.bf16.msra.mxu2 %v3020_v1  ;;  %v3045_v1 = vld [vmem:[%s3876_s2 + $0xb8] sm:$0xff] }
 0x1ba   :  { %v450_v14 = vpop.f32.mrf.mxu3 }
 0x1bb   :  { %v451_v15 = vadd.f32 %v3521_v13, %v450_v14  ;;  %v330_v16 = vpop.f32.mrf.mxu2  ;;  %860 = vmatpush.bf16.msra.mxu2 %v3019_v5 }
 0x1bc   :  { %v3524_v17 = vpop.eup %3158  ;;  %v3013_v16 = vld [vmem:[%s3876_s2 + $0x78] sm:$0xff] }
 0x1bd   :  { %3160 = vtanh.f32 %v451_v15  ;;  %v457_v18 = vpack.c.bf16 %v3524_v17, %v3524_v17 }
 0x1bf   :  { %2203 = vmatmul.msk.bf16.vlgmr.msra.gmra.mxu0 %vm92_vm0, %v457_v18  ;;  %861 = vmatpush.bf16.msra.mxu2 %v3018_v6  ;;  %v3012_v18 = vld [vmem:[%s3876_s2 + $0x70] sm:$0xff]  ;;  %v3042_v6 = vld [vmem:[%s3876_s2 + $0xa0] sm:$0xff] }
 0x1c0   :  { %690 = vmatpush.bf16.msra.mxu0 %v3005_v49  ;;  %v3065_v49 = vld [vmem:[%s3876_s2 + $0xd8] sm:$0xff] }
 0x1c2   :  { %v452_v20 = vpop.f32.mrf.mxu3 }
 0x1c3   :  { %v3161_v21 = vpop.eup %3160  ;;  %862 = vmatpush.bf16.msra.mxu2 %v3017_v7  ;;  %v3041_v7 = vld [vmem:[%s3876_s2 + $0x98] sm:$0xff] }
 0x1c4   :  { %v2253_v22 = vpack.c.bf16 %v3161_v21, %v3161_v21  ;;  %517 = vrot.lane.b32.xlu1 %v3161_v21, %s3226_s14 }
 0x1c6   :  { %2254 = vmatmul.msk.bf16.vlgmr.msra.gmra.mxu3 %vm3385_vm1, %v2253_v22  ;;  %v3011_v22 = vld [vmem:[%s3876_s2 + $0x68] sm:$0xff] }
 0x1c7   :  { %863 = vmatpush.bf16.msra.mxu2 %v3016_v8  ;;  %v3040_v8 = vld [vmem:[%s3876_s2 + $0x90] sm:$0xff] }
 0x1cb   :  { %864 = vmatpush.bf16.msra.mxu2 %v3015_v9 }
 0x1cf   :  { %865 = vmatpush.bf16.msra.mxu2 %v3014_v10 }
 0x221   :  { %v336_v23 = vpop.permute.xlu1 %335 }
 0x222   :  { %v338_v24 = vsel %vm92_vm0, %v3153_v54, %v336_v23  ;;  %v3010_v23 = vld [vmem:[%s3876_s2 + $0x60] sm:$0xff] }
 0x223   :  { %v339_v25 = vpack.c.bf16 %v338_v24, %v338_v24  ;;  %v3009_v24 = vld [vmem:[%s3876_s2 + $0x58] sm:$0xff] }
 0x225   :  { %348 = vmatmul.bf16.vlgmr.msrb.gmra.mxu1 %v339_v25 }
 0x226   :  { %774 = vmatpush.bf16.msrb.mxu1 %v3013_v16 }
 0x22a   :  { %775 = vmatpush.bf16.msrb.mxu1 %v3012_v18 }
 0x22e   :  { %776 = vmatpush.bf16.msrb.mxu1 %v3011_v22 }
 0x232   :  { %777 = vmatpush.bf16.msrb.mxu1 %v3010_v23  ;;  %v3037_v23 = vld [vmem:[%s3876_s2 + $0x78] sm:$0xff] }
 0x235   :  { %v369_v26 = vpop.f32.mrf.mxu2 }
 0x236   :  { %v370_v27 = vadd.f32 %v3479_v50, %v369_v26  ;;  %v518_v30 = vpop.permute.xlu1 %517  ;;  %778 = vmatpush.bf16.msrb.mxu1 %v3009_v24  ;;  %v3036_v24 = vld [vmem:[%s3876_s2 + $0x70] sm:$0xff] }
 0x238   :  { %3162 = vtanh.f32 %v370_v27 }
 0x23c   :  { %v3544_v39 = vpop.f32.mrf.mxu0 }
 0x23d   :  { %v371_v28 = vpop.f32.mrf.mxu2 }
 0x23e   :  { %v3163_v29 = vpop.eup %3162 }
 0x23f   :  { %v520_v32 = vsel %vm92_vm0, %v3163_v29, %v518_v30  ;;  %497 = vrot.lane.b32.xlu2 %v3163_v29, %s3226_s14  ;;  %v3008_v29 = vld [vmem:[%s3876_s2 + $0x50] sm:$0xff]  ;;  %v3007_v30 = vld [vmem:[%s3876_s2 + $0x48] sm:$0xff] }
 0x240   :  { %v521_v33 = vpack.c.bf16 %v520_v32, %v520_v32  ;;  %779 = vmatpush.bf16.msrb.mxu1 %v3008_v29  ;;  %v3006_v32 = vld [vmem:[%s3876_s2 + $0x40] sm:$0xff]  ;;  %v3033_v29 = vld [vmem:[%s3876_s2 + $0x58] sm:$0xff] }
 0x242   :  { %530 = vmatmul.bf16.vlgmr.msrb.gmra.mxu2 %v521_v33  ;;  %v3053_v33 = vld [vmem:[%s3876_s2 + $0xf8] sm:$0xff] }
 0x243   :  { %1201 = vmatpush.bf16.msrb.mxu2 %v3053_v33 }
 0x244   :  { %v472_v40 = vpop.f32.mrf.mxu0  ;;  %780 = vmatpush.bf16.msrb.mxu1 %v3007_v30 }
 0x248   :  { %781 = vmatpush.bf16.msrb.mxu1 %v3006_v32 }
 0x249   :  { %v612_v34 = vpop.f32.mrf.mxu3 }
 0x24a   :  { %v613_v35 = vadd.f32 %v3539_v19, %v612_v34  ;;  %v3052_v34 = vld [vmem:[%s3876_s2 + $0xf0] sm:$0xff] }
 0x24b   :  { %1202 = vmatpush.bf16.msrb.mxu2 %v3052_v34 }
 0x24c   :  { %3164 = vtanh.f32 %v613_v35  ;;  %v3051_v35 = vld [vmem:[%s3876_s2 + $0xe8] sm:$0xff] }
 0x24f   :  { %1203 = vmatpush.bf16.msrb.mxu2 %v3051_v35  ;;  %v3032_v35 = vld [vmem:[%s3876_s2 + $0x50] sm:$0xff] }
 0x251   :  { %v614_v36 = vpop.f32.mrf.mxu3 }
 0x252   :  { %v3165_v37 = vpop.eup %3164  ;;  %v3050_v36 = vld [vmem:[%s3876_s2 + $0xe0] sm:$0xff] }
 0x253   :  { %v617_v38 = vpack.c.bf16 %v3165_v37, %v3165_v37  ;;  %873 = vrot.lane.b32.xlu0 %v3165_v37, %s3226_s14  ;;  %1204 = vmatpush.bf16.msrb.mxu2 %v3050_v36  ;;  %v3049_v37 = vld [vmem:[%s3876_s2 + $0xd8] sm:$0xff]  ;;  %v3031_v36 = vld [vmem:[%s3876_s2 + $0x48] sm:$0xff] }
 0x255   :  { %619 = vst.msk [vmem:[#allocation2] sm:$0xf] %vm618_vm2, %v617_v38 }
 0x257   :  { %1205 = vmatpush.bf16.msrb.mxu2 %v3049_v37 }
 0x299   :  { %v498_v53 = vpop.permute.xlu2 %497 }
 0x2a2   :  { %v349_v46 = vpop.f32.mrf.mxu1 }
 0x2a3   :  { %v350_v47 = vadd.f32 %v3437_v31, %v349_v46  ;;  %v3048_v46 = vld [vmem:[%s3876_s2 + $0xd0] sm:$0xff] }
 0x2a4   :  { %1206 = vmatpush.bf16.msrb.mxu2 %v3048_v46 }
 0x2a5   :  { %3166 = vtanh.f32 %v350_v47  ;;  %v3047_v47 = vld [vmem:[%s3876_s2 + $0xc8] sm:$0xff] }
 0x2a8   :  { %1207 = vmatpush.bf16.msrb.mxu2 %v3047_v47  ;;  %v3068_v47 = vld [vmem:[%s3876_s2 + $0xf0] sm:$0xff] }
 0x2aa   :  { %v351_v51 = vpop.f32.mrf.mxu1 }
 0x2ab   :  { %v3167_v52 = vpop.eup %3166  ;;  %v3004_v51 = vld [vmem:[%s3876_s2 + $0x30] sm:$0xff] }
 0x2ac   :  { %477 = vrot.lane.b32.xlu2 %v3167_v52, %s3226_s14  ;;  %v500_v54 = vsel %vm92_vm0, %v3167_v52, %v498_v53  ;;  %1208 = vmatpush.bf16.msrb.mxu2 %v3046_v48  ;;  %v3003_v52 = vld [vmem:[%s3876_s2 + $0x28] sm:$0xff]  ;;  %v3002_v53 = vld [vmem:[%s3876_s2 + $0x20] sm:$0xff] }
 0x2ad   :  { %v501_v55 = vpack.c.bf16 %v500_v54, %v500_v54  ;;  %691 = vmatpush.bf16.msra.mxu0 %v3004_v51  ;;  %v3001_v54 = vld [vmem:[%s3876_s2 + $0x18] sm:$0xff]  ;;  %v3066_v48 = vld [vmem:[%s3876_s2 + $0xe0] sm:$0xff]  ;;  %v3064_v51 = vld [vmem:[%s3876_s2 + $0xd0] sm:$0xff] }
 0x2af   :  { %510 = vmatmul.bf16.vlgmr.msra.gmra.mxu1 %v501_v55  ;;  %v3000_v55 = vld [vmem:[%s3876_s2 + $0x10] sm:$0xff] }
 0x2b0   :  { %1117 = vmatpush.bf16.msra.mxu1 %v3045_v1 }
 0x2b1   :  { %692 = vmatpush.bf16.msra.mxu0 %v3003_v52 }
 0x2b5   :  { %693 = vmatpush.bf16.msra.mxu0 %v3002_v53  ;;  %v3063_v53 = vld [vmem:[%s3876_s2 + $0xc8] sm:$0xff] }
 0x2b9   :  { %694 = vmatpush.bf16.msra.mxu0 %v3001_v54 }
 0x2bd   :  { %695 = vmatpush.bf16.msra.mxu0 %v3000_v55  ;;  %v3062_v55 = vld [vmem:[%s3876_s2 + $0xc0] sm:$0xff] }
 0x2c5   :  { %v531_v57 = vpop.f32.mrf.mxu2  ;;  %v874_v61 = vpop.permute.xlu0 %873 }
 0x2c6   :  { %v532_v58 = vadd.f32 %v3521_v13, %v531_v57 }
 0x2c8   :  { %3168 = vtanh.f32 %v532_v58  ;;  %v2999_v58 = vld [vmem:[%s3876_s2 + $0x8] sm:$0xff] }
 0x2c9   :  { %696 = vmatpush.bf16.msra.mxu0 %v2999_v58  ;;  %v3061_v58 = vld [vmem:[%s3876_s2 + $0xb8] sm:$0xff] }
 0x2ca   :  { %1287 = vmatpush.bf16.msra.mxu3 %v3061_v58  ;;  %v2853_v58 = vld [vmem:[#allocation4 + $0x108] sm:$0xf] }
 0x2cd   :  { %v533_v59 = vpop.f32.mrf.mxu2  ;;  %697 = vmatpush.bf16.msra.mxu0 %v2998_v0 }
 0x2ce   :  { %v3169_v60 = vpop.eup %3168 }
 0x2cf   :  { %v876_v62 = vsel %vm92_vm0, %v3169_v60, %v874_v61  ;;  %789 = vrot.lane.b32.xlu1 %v3169_v60, %s3226_s14 }
 0x2d0   :  { %v877_v63 = vpack.c.bf16 %v876_v62, %v876_v62 }
 0x2d2   :  { %950 = vmatmul.bf16.vlgmr.msrb.gmra.mxu3 %v877_v63 }
 0x306   :  { %v478_v2 = vpop.permute.xlu2 %477 }
 0x307   :  { %v480_v3 = vsel %vm92_vm0, %v3524_v17, %v478_v2  ;;  %v3044_v2 = vld [vmem:[%s3876_s2 + $0xb0] sm:$0xff] }
 0x308   :  { %v481_v4 = vpack.c.bf16 %v480_v3, %v480_v3  ;;  %1118 = vmatpush.bf16.msra.mxu1 %v3044_v2  ;;  %v2202_v3 = vld [vmem:[%s3874_s0 + $0x20] sm:$0xff] }
 0x309   :  { %v474_v5 = vadd.f32 %v2202_v3, %v3544_v39  ;;  %v3056_v3 = vld [vmem:[%s3876_s2 + $0x90] sm:$0xff] }
 0x30a   :  { %490 = vmatmul.bf16.vlgmr.msrb.gmra.mxu0 %v481_v4  ;;  %v3043_v4 = vld [vmem:[%s3876_s2 + $0xa8] sm:$0xff] }
 0x30b   :  { %1033 = vmatpush.bf16.msrb.mxu0 %v3037_v23 }
 0x30c   :  { %1119 = vmatpush.bf16.msra.mxu1 %v3043_v4  ;;  %v3055_v4 = vld [vmem:[%s3876_s2 + $0x88] sm:$0xff] }
 0x30f   :  { %1034 = vmatpush.bf16.msrb.mxu0 %v3036_v24  ;;  %v2781_v24 = vld [vmem:[#allocation4 + $0x78] sm:$0xf] }
 0x310   :  { %1120 = vmatpush.bf16.msra.mxu1 %v3042_v6 }
 0x314   :  { %1121 = vmatpush.bf16.msra.mxu1 %v3041_v7 }
 0x318   :  { %1122 = vmatpush.bf16.msra.mxu1 %v3040_v8 }
 0x32c   :  { %v511_v11 = vpop.f32.mrf.mxu1 }
 0x32d   :  { %v512_v12 = vadd.f32 %v3479_v50, %v511_v11 }
 0x32f   :  { %3170 = vtanh.f32 %v512_v12  ;;  %v3039_v12 = vld [vmem:[%s3876_s2 + $0x88] sm:$0xff] }
 0x330   :  { %1123 = vmatpush.bf16.msra.mxu1 %v3039_v12  ;;  %v2805_v12 = vld [vmem:[#allocation4 + $0xa8] sm:$0xf] }
 0x334   :  { %v513_v14 = vpop.f32.mrf.mxu1 }
 0x335   :  { %v3171_v15 = vpop.eup %3170  ;;  %v3038_v14 = vld [vmem:[%s3876_s2 + $0x80] sm:$0xff] }
 0x336   :  { %705 = vrot.lane.b32.xlu2 %v3171_v15, %s3226_s14  ;;  %1124 = vmatpush.bf16.msra.mxu1 %v3038_v14  ;;  %v3100_v14 = vld [vmem:[#allocation4 + $0xb0] sm:$0xf0] }
 0x341   :  { %v790_v17 = vpop.permute.xlu1 %789 }
 0x342   :  { %v792_v20 = vsel %vm92_vm0, %v3171_v15, %v790_v17 }
 0x343   :  { %v793_v21 = vpack.c.bf16 %v792_v20, %v792_v20 }
 0x345   :  { %866 = vmatmul.bf16.vlgmr.msra.gmra.mxu2 %v793_v21 }
 0x355   :  { %v951_v25 = vpop.f32.mrf.mxu3 }
 0x356   :  { %v952_v26 = vadd.f32 %v3539_v19, %v951_v25  ;;  %v3035_v25 = vld [vmem:[%s3876_s2 + $0x68] sm:$0xff] }
 0x357   :  { %1035 = vmatpush.bf16.msrb.mxu0 %v3035_v25  ;;  %v3094_v25 = vld [vmem:[#allocation4 + $0x80] sm:$0xf0] }
 0x358   :  { %3172 = vtanh.f32 %v952_v26  ;;  %v3034_v26 = vld [vmem:[%s3876_s2 + $0x60] sm:$0xff] }
 0x35b   :  { %1036 = vmatpush.bf16.msrb.mxu0 %v3034_v26  ;;  %v2782_v26 = vor.u32 %v3094_v25, %v2781_v24 }
 0x35d   :  { %v953_v27 = vpop.f32.mrf.mxu3 }
 0x35e   :  { %v3621_v28 = vpop.eup %3172 }
 0x35f   :  { %1132 = vrot.lane.b32.xlu1 %v3621_v28, %s3226_s14  ;;  %1037 = vmatpush.bf16.msrb.mxu0 %v3033_v29  ;;  %v956_v37 = vpack.c.bf16 %v3621_v28, %v3621_v28  ;;  %v3069_v28 = vld [vmem:[%s3876_s2 + $0xf8] sm:$0xff] }
 0x360   :  { %v3091_v29 = vld [vmem:[#allocation4 + $0x68] sm:$0xf0] }
 0x363   :  { %1038 = vmatpush.bf16.msrb.mxu0 %v3032_v35  ;;  %v2757_v35 = vld [vmem:[#allocation4 + $0x48] sm:$0xf] }
 0x367   :  { %1039 = vmatpush.bf16.msrb.mxu0 %v3031_v36  ;;  %v3088_v36 = vld [vmem:[#allocation4 + $0x50] sm:$0xf0] }
 0x387   :  { %v491_v38 = vpop.f32.mrf.mxu0 }
 0x388   :  { %v492_v40 = vadd.f32 %v3437_v31, %v491_v38  ;;  %v3030_v38 = vld [vmem:[%s3876_s2 + $0x40] sm:$0xff] }
 0x389   :  { %1040 = vmatpush.bf16.msrb.mxu0 %v3030_v38  ;;  %v3076_v38 = vld [vmem:[%s3876_s2 + $0xf0] sm:$0xff] }
 0x38a   :  { %3174 = vtanh.f32 %v492_v40 }
 0x38f   :  { %v493_v41 = vpop.f32.mrf.mxu0 }
 0x390   :  { %v3175_v42 = vpop.eup %3174  ;;  %v706_v43 = vpop.permute.xlu2 %705 }
 0x391   :  { %v708_v44 = vsel %vm92_vm0, %v3175_v42, %v706_v43  ;;  %621 = vrot.lane.b32.xlu0 %v3175_v42, %s3226_s14 }
 0x392   :  { %v709_v45 = vpack.c.bf16 %v708_v44, %v708_v44 }
 0x394   :  { %782 = vmatmul.bf16.vlgmr.msrb.gmra.mxu1 %v709_v45 }
 0x3c8   :  { %v867_v56 = vpop.f32.mrf.mxu2 }
 0x3c9   :  { %v868_v57 = vadd.f32 %v3521_v13, %v867_v56 }
 0x3cb   :  { %3176 = vtanh.f32 %v868_v57 }
 0x3cc   :  { %3178 = vtanh.f32 %v474_v5  ;;  %v3054_v5 = vld [vmem:[%s3876_s2 + $0x80] sm:$0xff] }
 0x3d0   :  { %v869_v59 = vpop.f32.mrf.mxu2 }
 0x3d1   :  { %v3177_v60 = vpop.eup %3176  ;;  %v1133_v61 = vpop.permute.xlu1 %1132  ;;  %v3060_v59 = vld [vmem:[%s3876_s2 + $0xb0] sm:$0xff] }
 0x3d2   :  { %v1135_v62 = vsel %vm92_vm0, %v3177_v60, %v1133_v61  ;;  %1048 = vrot.lane.b32.xlu2 %v3177_v60, %s3226_s14  ;;  %v3179_v9 = vpop.eup %3178  ;;  %1288 = vmatpush.bf16.msra.mxu3 %v3060_v59  ;;  %v3059_v60 = vld [vmem:[%s3876_s2 + $0xa8] sm:$0xff]  ;;  %v3058_v61 = vld [vmem:[%s3876_s2 + $0xa0] sm:$0xff] }
 0x3d3   :  { %v1136_v63 = vpack.c.bf16 %v1135_v62, %v1135_v62  ;;  %v3057_v62 = vld [vmem:[%s3876_s2 + $0x98] sm:$0xff]  ;;  %v3112_v59 = vld [vmem:[#allocation4 + $0x110] sm:$0xf0] }
 0x3d5   :  { %1209 = vmatmul.bf16.vlgmr.msrb.gmra.mxu2 %v1136_v63 }
 0x3d6   :  { %1289 = vmatpush.bf16.msra.mxu3 %v3059_v60  ;;  %v3123_v60 = vld [vmem:[#allocation4 + $0x16c] sm:$0xf] }
 0x3da   :  { %1290 = vmatpush.bf16.msra.mxu3 %v3058_v61  ;;  %v2903_v61 = vld [vmem:[#allocation4 + $0x174] sm:$0xf0] }
 0x3de   :  { %1291 = vmatpush.bf16.msra.mxu3 %v3057_v62 }
 0x3e2   :  { %1292 = vmatpush.bf16.msra.mxu3 %v3056_v3  ;;  %v3109_v3 = vld [vmem:[#allocation4 + $0xf8] sm:$0xf0] }
 0x3e6   :  { %1293 = vmatpush.bf16.msra.mxu3 %v3055_v4  ;;  %v3120_v4 = vld [vmem:[#allocation4 + $0x154] sm:$0xf] }
 0x3ea   :  { %1294 = vmatpush.bf16.msra.mxu3 %v3054_v5  ;;  %v3072_v5 = vld [vmem:[%s3876_s2 + $0xd0] sm:$0xff] }
 0x403   :  { %v622_v10 = vpop.permute.xlu0 %621 }
 0x404   :  { %v624_v39 = vsel %vm92_vm0, %v3179_v9, %v622_v10 }
 0x405   :  { %v625_v11 = vpack.c.bf16 %v624_v39, %v624_v39 }
 0x407   :  { %698 = vmatmul.bf16.vlgmr.msra.gmra.mxu0 %v625_v11 }
 0x408   :  { %1371 = vmatpush.bf16.msra.mxu0 %v3069_v28 }
 0x40c   :  { %1372 = vmatpush.bf16.msra.mxu0 %v3068_v47  ;;  %v3075_v47 = vld [vmem:[%s3876_s2 + $0xe8] sm:$0xff] }
 0x411   :  { %v783_v15 = vpop.f32.mrf.mxu1 }
 0x412   :  { %v784_v16 = vadd.f32 %v3479_v50, %v783_v15  ;;  %v2806_v15 = vor.u32 %v3100_v14, %v2805_v12  ;;  %v3117_v12 = vld [vmem:[#allocation4 + $0x13c] sm:$0xf]  ;;  %v2879_v14 = vld [vmem:[#allocation4 + $0x144] sm:$0xf0] }
 0x414   :  { %3180 = vtanh.f32 %v784_v16  ;;  %1900 = vmatpush.bf16.msra.mxu2 %v2806_v15 }
 0x419   :  { %v785_v17 = vpop.f32.mrf.mxu1 }
 0x41a   :  { %v3181_v18 = vpop.eup %3180 }
 0x41b   :  { %964 = vrot.lane.b32.xlu0 %v3181_v18, %s3226_s14 }
 0x42c   :  { %v1049_v20 = vpop.permute.xlu2 %1048 }
 0x42d   :  { %v1051_v21 = vsel %vm92_vm0, %v3181_v18, %v1049_v20 }
 0x42e   :  { %v1052_v22 = vpack.c.bf16 %v1051_v21, %v1051_v21  ;;  %v2793_v21 = vld [vmem:[#allocation4 + $0x90] sm:$0xf] }
 0x430   :  { %1125 = vmatmul.bf16.vlgmr.msra.gmra.mxu1 %v1052_v22  ;;  %v3097_v22 = vld [vmem:[#allocation4 + $0x98] sm:$0xf0] }
 0x431   :  { %v2794_v23 = vor.u32 %v3097_v22, %v2793_v21  ;;  %v3099_v21 = vld [vmem:[#allocation4 + $0xac] sm:$0xf]  ;;  %v2807_v22 = vld [vmem:[#allocation4 + $0xb4] sm:$0xf0] }
 0x433   :  { %1901 = vmatpush.bf16.msra.mxu2 %v2794_v23  ;;  %v3070_v23 = vld [vmem:[%s3876_s2 + $0xc0] sm:$0xff] }
 0x437   :  { %1902 = vmatpush.bf16.msra.mxu2 %v2782_v26  ;;  %v2810_v26 = vor.u32 %v3099_v21, %v2807_v22  ;;  %v3130_v21 = vld [vmem:[#allocation4 + $0x1a0] sm:$0xf0]  ;;  %v3129_v22 = vld [vmem:[#allocation4 + $0x19c] sm:$0xf] }
 0x458   :  { %v1210_v27 = vpop.f32.mrf.mxu2 }
 0x459   :  { %v1211_v30 = vadd.f32 %v3539_v19, %v1210_v27  ;;  %v2769_v27 = vld [vmem:[#allocation4 + $0x60] sm:$0xf] }
 0x45b   :  { %3182 = vtanh.f32 %v1211_v30  ;;  %v2770_v30 = vor.u32 %v3091_v29, %v2769_v27  ;;  %v3111_v29 = vld [vmem:[#allocation4 + $0x10c] sm:$0xf] }
 0x45d   :  { %1903 = vmatpush.bf16.msra.mxu2 %v2770_v30  ;;  %v2855_v30 = vld [vmem:[#allocation4 + $0x114] sm:$0xf0] }
 0x460   :  { %v1212_v32 = vpop.f32.mrf.mxu2 }
 0x461   :  { %v3183_v33 = vpop.eup %3182  ;;  %v2901_v32 = vld [vmem:[#allocation4 + $0x168] sm:$0xf] }
 0x462   :  { %v1215_v34 = vpack.c.bf16 %v3183_v33, %v3183_v33  ;;  %1302 = vrot.lane.b32.xlu1 %v3183_v33, %s3226_s14  ;;  %v3124_v33 = vld [vmem:[#allocation4 + $0x170] sm:$0xf0] }
 0x464   :  { %1216 = vst.msk [vmem:[#allocation2 + $0x4] sm:$0xf] %vm618_vm2, %v1215_v34  ;;  %v2902_v34 = vor.u32 %v3124_v33, %v2901_v32  ;;  %v3096_v32 = vld [vmem:[#allocation4 + $0x94] sm:$0xf]  ;;  %v2795_v33 = vld [vmem:[#allocation4 + $0x9c] sm:$0xf0] }
 0x466   :  { %1913 = vmatpush.bf16.msrb.mxu3 %v2902_v34  ;;  %v2798_v34 = vor.u32 %v3096_v32, %v2795_v33  ;;  %v2813_v32 = vld [vmem:[#allocation4 + $0xb0] sm:$0xf]  ;;  %v3101_v33 = vld [vmem:[#allocation4 + $0xb8] sm:$0xf0] }
 0x46a   :  { %958 = vrot.lane.b32.xlu1 %v956_v37, %s3226_s14  ;;  %v2758_v37 = vor.u32 %v3088_v36, %v2757_v35  ;;  %v3108_v35 = vld [vmem:[#allocation4 + $0xf4] sm:$0xf]  ;;  %v2843_v36 = vld [vmem:[#allocation4 + $0xfc] sm:$0xf0] }
 0x46c   :  { %1904 = vmatpush.bf16.msra.mxu2 %v2758_v37  ;;  %v3093_v37 = vld [vmem:[#allocation4 + $0x7c] sm:$0xf] }
 0x484   :  { %v699_v40 = vpop.f32.mrf.mxu0 }
 0x485   :  { %v700_v41 = vadd.f32 %v3437_v31, %v699_v40  ;;  %v3067_v31 = vld [vmem:[%s3876_s2 + $0xe8] sm:$0xff]  ;;  %v2889_v40 = vld [vmem:[#allocation4 + $0x150] sm:$0xf] }
 0x486   :  { %1373 = vmatpush.bf16.msra.mxu0 %v3067_v31 }
 0x487   :  { %3184 = vtanh.f32 %v700_v41  ;;  %v3121_v41 = vld [vmem:[#allocation4 + $0x158] sm:$0xf0] }
 0x48a   :  { %1374 = vmatpush.bf16.msra.mxu0 %v3066_v48  ;;  %v2733_v48 = vld [vmem:[#allocation4 + $0x18] sm:$0xf] }
 0x48c   :  { %v701_v42 = vpop.f32.mrf.mxu0 }
 0x48d   :  { %v3185_v43 = vpop.eup %3184  ;;  %v965_v44 = vpop.permute.xlu0 %964  ;;  %v2890_v42 = vor.u32 %v3121_v41, %v2889_v40  ;;  %v2846_v40 = vor.u32 %v3108_v35, %v2843_v36  ;;  %v2814_v35 = vor.u32 %v3101_v33, %v2813_v32  ;;  %v2909_v36 = vld [vmem:[#allocation4 + $0x170] sm:$0xf]  ;;  %v3080_v32 = vld [vmem:[#allocation4 + $0x10] sm:$0xf0] }
 0x48e   :  { %v967_v45 = vsel %vm92_vm0, %v3185_v43, %v965_v44  ;;  %1375 = vmatpush.bf16.msra.mxu0 %v3065_v49  ;;  %v2745_v43 = vld [vmem:[#allocation4 + $0x30] sm:$0xf]  ;;  %v3085_v44 = vld [vmem:[#allocation4 + $0x38] sm:$0xf0]  ;;  %v3082_v49 = vld [vmem:[#allocation4 + $0x20] sm:$0xf0] }
 0x48f   :  { %v968_v46 = vpack.c.bf16 %v967_v45, %v967_v45  ;;  %v2877_v45 = vld [vmem:[#allocation4 + $0x138] sm:$0xf]  ;;  %v2746_v28 = vor.u32 %v3085_v44, %v2745_v43  ;;  %1914 = vmatpush.bf16.msrb.mxu3 %v2890_v42  ;;  %v3105_v42 = vld [vmem:[#allocation4 + $0xdc] sm:$0xf]  ;;  %v2831_v43 = vld [vmem:[#allocation4 + $0xe4] sm:$0xf0] }
 0x490   :  { %v2834_v44 = vor.u32 %v3105_v42, %v2831_v43  ;;  %v2801_v43 = vld [vmem:[#allocation4 + $0x98] sm:$0xf] }
 0x491   :  { %1041 = vmatmul.bf16.vlgmr.msrb.gmra.mxu0 %v968_v46  ;;  %v3118_v46 = vld [vmem:[#allocation4 + $0x140] sm:$0xf0]  ;;  %1905 = vmatpush.bf16.msra.mxu2 %v2746_v28 }
 0x492   :  { %1376 = vmatpush.bf16.msra.mxu0 %v3064_v51  ;;  %v2878_v31 = vor.u32 %v3118_v46, %v2877_v45  ;;  %v2865_v51 = vld [vmem:[#allocation4 + $0x120] sm:$0xf]  ;;  %v3090_v45 = vld [vmem:[#allocation4 + $0x64] sm:$0xf]  ;;  %v2771_v46 = vld [vmem:[#allocation4 + $0x6c] sm:$0xf0] }
 0x493   :  { %v2774_v28 = vor.u32 %v3090_v45, %v2771_v46  ;;  %v2897_v45 = vld [vmem:[#allocation4 + $0x158] sm:$0xf] }
 0x494   :  { %1915 = vmatpush.bf16.msrb.mxu3 %v2878_v31  ;;  %v2819_v31 = vld [vmem:[#allocation4 + $0xcc] sm:$0xf0] }
 0x496   :  { %1377 = vmatpush.bf16.msra.mxu0 %v3063_v53  ;;  %v2734_v53 = vor.u32 %v3082_v49, %v2733_v48  ;;  %v3087_v49 = vld [vmem:[#allocation4 + $0x4c] sm:$0xf] }
 0x498   :  { %1906 = vmatpush.bf16.msra.mxu2 %v2734_v53  ;;  %v3084_v53 = vld [vmem:[#allocation4 + $0x34] sm:$0xf] }
 0x49a   :  { %1378 = vmatpush.bf16.msra.mxu0 %v3062_v55 }
 0x4ad   :  { %v1126_v52 = vpop.f32.mrf.mxu1 }
 0x4ae   :  { %v1127_v54 = vadd.f32 %v3521_v13, %v1126_v52  ;;  %v3115_v52 = vld [vmem:[#allocation4 + $0x128] sm:$0xf0] }
 0x4af   :  { %v2866_v55 = vor.u32 %v3115_v52, %v2865_v51  ;;  %v2759_v51 = vld [vmem:[#allocation4 + $0x54] sm:$0xf0] }
 0x4b0   :  { %3186 = vtanh.f32 %v1127_v54  ;;  %v3074_v54 = vld [vmem:[%s3876_s2 + $0xe0] sm:$0xff]  ;;  %v2762_v52 = vor.u32 %v3087_v49, %v2759_v51  ;;  %v2789_v51 = vld [vmem:[#allocation4 + $0x80] sm:$0xf] }
 0x4b1   :  { %1916 = vmatpush.bf16.msrb.mxu3 %v2866_v55 }
 0x4b5   :  { %v1128_v56 = vpop.f32.mrf.mxu1 }
 0x4b6   :  { %v3187_v57 = vpop.eup %3186  ;;  %v2721_v56 = vld [vmem:[#allocation4] sm:$0xf] }
 0x4b7   :  { %1218 = vrot.lane.b32.xlu2 %v3187_v57, %s3226_s14 }
 0x4d4   :  { %v1303_v63 = vpop.permute.xlu1 %1302 }
 0x4d5   :  { %v1305_v0 = vsel %vm92_vm0, %v3187_v57, %v1303_v63  ;;  %v3079_v57 = vld [vmem:[#allocation4 + $0x8] sm:$0xf0] }
 0x4d6   :  { %v1306_v1 = vpack.c.bf16 %v1305_v0, %v1305_v0  ;;  %v2722_v62 = vor.u32 %v3079_v57, %v2721_v56  ;;  %v3073_v63 = vld [vmem:[%s3876_s2 + $0xd8] sm:$0xff]  ;;  %v2854_v0 = vor.u32 %v3112_v59, %v2853_v58  ;;  %v3081_v56 = vld [vmem:[#allocation4 + $0x1c] sm:$0xf]  ;;  %v2735_v57 = vld [vmem:[#allocation4 + $0x24] sm:$0xf0] }
 0x4d7   :  { %v2738_v58 = vor.u32 %v3081_v56, %v2735_v57  ;;  %v2933_v56 = vld [vmem:[#allocation4 + $0x1a0] sm:$0xf]  ;;  %v3131_v57 = vld [vmem:[#allocation4 + $0x1a8] sm:$0xf0] }
 0x4d8   :  { %1379 = vmatmul.bf16.vlgmr.msra.gmra.mxu0 %v1306_v1  ;;  %v2906_v1 = vor.u32 %v3123_v60, %v2903_v61  ;;  %1907 = vmatpush.bf16.msra.mxu2 %v2722_v62  ;;  %v3078_v60 = vld [vmem:[#allocation4 + $0x4] sm:$0xf]  ;;  %v2723_v61 = vld [vmem:[#allocation4 + $0xc] sm:$0xf0] }
 0x4d9   :  { %1917 = vmatpush.bf16.msrb.mxu3 %v2854_v0  ;;  %v2726_v62 = vor.u32 %v3078_v60, %v2723_v61  ;;  %v2777_v60 = vld [vmem:[#allocation4 + $0x68] sm:$0xf]  ;;  %v3092_v61 = vld [vmem:[#allocation4 + $0x70] sm:$0xf0] }
 0x4dc   :  { %v959_v2 = vpop.permute.xlu1 %958  ;;  %1952 = vmatpush.bf16.msrb.mxu2 %v2906_v1 }
 0x4dd   :  { %962 = vst.msk [vmem:[#allocation2] sm:$0xf] %vm961_vm3, %v959_v2  ;;  %v2841_v2 = vld [vmem:[#allocation4 + $0xf0] sm:$0xf] }
 0x50e   :  { %v1042_v6 = vpop.f32.mrf.mxu0 }
 0x50f   :  { %v1043_v7 = vadd.f32 %v3479_v50, %v1042_v6  ;;  %v2842_v6 = vor.u32 %v3109_v3, %v2841_v2 }
 0x511   :  { %3188 = vtanh.f32 %v1043_v7  ;;  %v1219_v10 = vpop.permute.xlu2 %1218  ;;  %v2891_v7 = vld [vmem:[#allocation4 + $0x15c] sm:$0xf0]  ;;  %1918 = vmatpush.bf16.msrb.mxu3 %v2842_v6 }
 0x516   :  { %v1044_v8 = vpop.f32.mrf.mxu0 }
 0x517   :  { %v3189_v9 = vpop.eup %3188  ;;  %v2894_v8 = vor.u32 %v3120_v4, %v2891_v7 }
 0x518   :  { %v1221_v39 = vsel %vm92_vm0, %v3189_v9, %v1219_v10  ;;  %v2829_v9 = vld [vmem:[#allocation4 + $0xd8] sm:$0xf]  ;;  %v3106_v10 = vld [vmem:[#allocation4 + $0xe0] sm:$0xf0] }
 0x519   :  { %v1222_v11 = vpack.c.bf16 %v1221_v39, %v1221_v39  ;;  %v3071_v39 = vld [vmem:[%s3876_s2 + $0xc8] sm:$0xff]  ;;  %1953 = vmatpush.bf16.msrb.mxu2 %v2894_v8 }
 0x51b   :  { %1295 = vmatmul.bf16.vlgmr.msra.gmra.mxu3 %v1222_v11  ;;  %v2830_v11 = vor.u32 %v3106_v10, %v2829_v9  ;;  %v2949_v9 = vld [vmem:[#allocation4 + $0x1c8] sm:$0xf]  ;;  %v3136_v10 = vld [vmem:[#allocation4 + $0x1d0] sm:$0xf0] }
 0x51d   :  { %1919 = vmatpush.bf16.msrb.mxu3 %v2830_v11  ;;  %v2950_v11 = vor.u32 %v3136_v10, %v2949_v9  ;;  %v2765_v9 = vld [vmem:[#allocation4 + $0x50] sm:$0xf]  ;;  %v3089_v10 = vld [vmem:[#allocation4 + $0x58] sm:$0xf0] }
 0x51f   :  { %1930 = vmatpush.bf16.msrb.mxu0 %v2950_v11  ;;  %v2766_v11 = vor.u32 %v3089_v10, %v2765_v9 }
 0x555   :  { %v1380_v16 = vpop.f32.mrf.mxu0 }
 0x556   :  { %v1381_v17 = vadd.f32 %v3539_v19, %v1380_v16  ;;  %v3077_v19 = vld [vmem:[%s3876_s2 + $0xf8] sm:$0xff]  ;;  %v2882_v16 = vor.u32 %v3117_v12, %v2879_v14 }
 0x557   :  { %1461 = vmatpush.bf16.msrb.mxu1 %v3077_v19  ;;  %v2858_v19 = vor.u32 %v3111_v29, %v2855_v30  ;;  %v2937_v14 = vld [vmem:[#allocation4 + $0x1b0] sm:$0xf]  ;;  %v3126_v29 = vld [vmem:[#allocation4 + $0x184] sm:$0xf] }
 0x558   :  { %3190 = vtanh.f32 %v1381_v17  ;;  %v2817_v17 = vld [vmem:[#allocation4 + $0xc0] sm:$0xf]  ;;  %1954 = vmatpush.bf16.msrb.mxu2 %v2882_v16  ;;  %v3132_v16 = vld [vmem:[#allocation4 + $0x1b4] sm:$0xf] }
 0x55b   :  { %1462 = vmatpush.bf16.msrb.mxu1 %v3076_v38  ;;  %v2783_v38 = vld [vmem:[#allocation4 + $0x84] sm:$0xf0] }
 0x55c   :  { %v2786_v41 = vor.u32 %v3093_v37, %v2783_v38  ;;  %v3125_v37 = vld [vmem:[#allocation4 + $0x178] sm:$0xf0]  ;;  %v2957_v38 = vld [vmem:[#allocation4 + $0x1d0] sm:$0xf] }
 0x55d   :  { %v1382_v18 = vpop.f32.mrf.mxu0 }
 0x55e   :  { %v3191_v20 = vpop.eup %3190  ;;  %v3103_v18 = vld [vmem:[#allocation4 + $0xc8] sm:$0xf0] }
 0x55f   :  { %1392 = vrot.lane.b32.xlu0 %v3191_v20, %s3226_s14  ;;  %v1385_v50 = vpack.c.bf16 %v3191_v20, %v3191_v20  ;;  %1463 = vmatpush.bf16.msrb.mxu1 %v3075_v47  ;;  %v3114_v20 = vld [vmem:[#allocation4 + $0x124] sm:$0xf]  ;;  %v2818_v24 = vor.u32 %v3103_v18, %v2817_v17  ;;  %v2939_v18 = vld [vmem:[#allocation4 + $0x1bc] sm:$0xf0] }
 0x560   :  { %v3102_v47 = vld [vmem:[#allocation4 + $0xc4] sm:$0xf] }
 0x561   :  { %1387 = vrot.lane.b32.xlu2 %v1385_v50, %s3226_s14  ;;  %v2867_v50 = vld [vmem:[#allocation4 + $0x12c] sm:$0xf0]  ;;  %1920 = vmatpush.bf16.msrb.mxu3 %v2818_v24  ;;  %v2822_v48 = vor.u32 %v3102_v47, %v2819_v31  ;;  %v2927_v24 = vld [vmem:[#allocation4 + $0x1a4] sm:$0xf0]  ;;  %v2945_v47 = vld [vmem:[#allocation4 + $0x1b8] sm:$0xf] }
 0x562   :  { %v2870_v25 = vor.u32 %v3114_v20, %v2867_v50  ;;  %v2942_v20 = vor.u32 %v3132_v16, %v2939_v18  ;;  %v2925_v50 = vld [vmem:[#allocation4 + $0x198] sm:$0xf]  ;;  %v3134_v31 = vld [vmem:[#allocation4 + $0x1c0] sm:$0xf0] }
 0x563   :  { %1464 = vmatpush.bf16.msrb.mxu1 %v3074_v54  ;;  %v2747_v54 = vld [vmem:[#allocation4 + $0x3c] sm:$0xf0]  ;;  %v2946_v49 = vor.u32 %v3134_v31, %v2945_v47  ;;  %v2753_v16 = vld [vmem:[#allocation4 + $0x38] sm:$0xf] }
 0x564   :  { %1955 = vmatpush.bf16.msrb.mxu2 %v2870_v25  ;;  %v2750_v55 = vor.u32 %v3084_v53, %v2747_v54  ;;  %v2930_v25 = vor.u32 %v3129_v22, %v2927_v24  ;;  %v2885_v53 = vld [vmem:[#allocation4 + $0x140] sm:$0xf]  ;;  %v2849_v18 = vld [vmem:[#allocation4 + $0xf8] sm:$0xf]  ;;  %v3083_v24 = vld [vmem:[#allocation4 + $0x28] sm:$0xf0] }
 0x567   :  { %1465 = vmatpush.bf16.msrb.mxu1 %v3073_v63 }
 0x568   :  { %1956 = vmatpush.bf16.msrb.mxu2 %v2858_v19  ;;  %v2915_v19 = vld [vmem:[#allocation4 + $0x18c] sm:$0xf0] }
 0x56b   :  { %1466 = vmatpush.bf16.msrb.mxu1 %v3072_v5 }
 0x56c   :  { %1957 = vmatpush.bf16.msrb.mxu2 %v2846_v40  ;;  %v2910_v40 = vor.u32 %v3125_v37, %v2909_v36  ;;  %v3196_v36 = vld [vmem:[%s3877_s3 + $0x4] ss:$0 sm:$0xff] }
 0x56f   :  { %1467 = vmatpush.bf16.msrb.mxu1 %v3071_v39  ;;  %v3135_v39 = vld [vmem:[#allocation4 + $0x1cc] sm:$0xf] }
 0x570   :  { %1958 = vmatpush.bf16.msrb.mxu2 %v2834_v44  ;;  %v3098_v44 = vld [vmem:[#allocation4 + $0xa0] sm:$0xf0] }
 0x571   :  { %v2802_v46 = vor.u32 %v3098_v44, %v2801_v43 }
 0x573   :  { %1468 = vmatpush.bf16.msrb.mxu1 %v3070_v23  ;;  %v2926_v23 = vor.u32 %v3130_v21, %v2925_v50  ;;  %v3110_v21 = vld [vmem:[#allocation4 + $0x100] sm:$0xf0] }
 0x574   :  { %1959 = vmatpush.bf16.msrb.mxu2 %v2822_v48  ;;  %v2850_v22 = vor.u32 %v3110_v21, %v2849_v18 }
 0x577   :  { %1939 = vmatpush.bf16.msra.mxu1 %v2810_v26  ;;  %v2913_v26 = vld [vmem:[#allocation4 + $0x180] sm:$0xf] }
 0x57b   :  { %1940 = vmatpush.bf16.msra.mxu1 %v2798_v34  ;;  %v2918_v34 = vor.u32 %v3126_v29, %v2915_v19  ;;  %v2729_v19 = vld [vmem:[#allocation4 + $0x8] sm:$0xf] }
 0x57f   :  { %1941 = vmatpush.bf16.msra.mxu1 %v2786_v41  ;;  %v3137_v41 = vld [vmem:[#allocation4 + $0x1d8] sm:$0xf0] }
 0x580   :  { %v2958_v42 = vor.u32 %v3137_v41, %v2957_v38  ;;  %v2730_v41 = vor.u32 %v3080_v32, %v2729_v19 }
 0x583   :  { %1942 = vmatpush.bf16.msra.mxu1 %v2774_v28  ;;  %v3122_v28 = vld [vmem:[#allocation4 + $0x160] sm:$0xf0] }
 0x584   :  { %v2898_v48 = vor.u32 %v3122_v28, %v2897_v45 }
 0x587   :  { %1943 = vmatpush.bf16.msra.mxu1 %v2762_v52  ;;  %v3095_v52 = vld [vmem:[#allocation4 + $0x88] sm:$0xf0] }
 0x588   :  { %v2790_v54 = vor.u32 %v3095_v52, %v2789_v51 }
 0x58b   :  { %1944 = vmatpush.bf16.msra.mxu1 %v2750_v55  ;;  %v3119_v55 = vld [vmem:[#allocation4 + $0x148] sm:$0xf0] }
 0x58f   :  { %1945 = vmatpush.bf16.msra.mxu1 %v2738_v58  ;;  %v2886_v58 = vor.u32 %v3119_v55, %v2885_v53 }
 0x593   :  { %1946 = vmatpush.bf16.msra.mxu1 %v2726_v62  ;;  %v2873_v62 = vld [vmem:[#allocation4 + $0x128] sm:$0xf] }
 0x59e   :  { %v3830_v15 = vpop.f32.mrf.mxu3 }
 0x59f   :  { %v1297_v4 = vadd.f32 %v3521_v13, %v3830_v15  ;;  %v2951_v13 = vld [vmem:[#allocation4 + $0x1d4] sm:$0xf0]  ;;  %v3133_v15 = vld [vmem:[#allocation4 + $0x1b8] sm:$0xf0] }
 0x5a0   :  { %v2954_v12 = vor.u32 %v3135_v39, %v2951_v13  ;;  %v2938_v17 = vor.u32 %v3133_v15, %v2937_v14  ;;  %v2861_v39 = vld [vmem:[#allocation4 + $0x110] sm:$0xf]  ;;  %v3113_v13 = vld [vmem:[#allocation4 + $0x118] sm:$0xf0] }
 0x5a1   :  { %3192 = vtanh.f32 %v1297_v4  ;;  %v3128_v4 = vld [vmem:[#allocation4 + $0x190] sm:$0xf0]  ;;  %v2862_v15 = vor.u32 %v3113_v13, %v2861_v39 }
 0x5a2   :  { %1969 = vmatpush.bf16.msra.mxu3 %v2954_v12  ;;  %1931 = vmatpush.bf16.msrb.mxu0 %v2938_v17  ;;  %v3086_v17 = vld [vmem:[#allocation4 + $0x40] sm:$0xf0] }
 0x5a3   :  { %v2754_v50 = vor.u32 %v3086_v17, %v2753_v16  ;;  %v2034_v17 = vstv %s3881_s7 }
 0x5a6   :  { %v1298_v27 = vpop.f32.mrf.mxu3  ;;  %1970 = vmatpush.bf16.msra.mxu3 %v2942_v20  ;;  %1932 = vmatpush.bf16.msrb.mxu0 %v2926_v23  ;;  %v2741_v23 = vld [vmem:[#allocation4 + $0x20] sm:$0xf] }
 0x5a7   :  { %v3193_v5 = vpop.eup %3192  ;;  %v3127_v27 = vld [vmem:[#allocation4 + $0x188] sm:$0xf0]  ;;  %v2742_v29 = vor.u32 %v3083_v24, %v2741_v23 }
 0x5a8   :  { %v2914_v30 = vor.u32 %v3127_v27, %v2913_v26  ;;  %v2837_v26 = vld [vmem:[#allocation4 + $0xe0] sm:$0xf]  ;;  %v3107_v27 = vld [vmem:[#allocation4 + $0xe8] sm:$0xf0] }
 0x5aa   :  { %1971 = vmatpush.bf16.msra.mxu3 %v2930_v25  ;;  %1933 = vmatpush.bf16.msrb.mxu0 %v2914_v30  ;;  %v2838_v30 = vor.u32 %v3107_v27, %v2837_v26 }
 0x5ae   :  { %1972 = vmatpush.bf16.msra.mxu3 %v2918_v34  ;;  %1978 = vmatpush.bf16.msra.mxu0 %v2814_v35  ;;  %v2825_v34 = vld [vmem:[#allocation4 + $0xc8] sm:$0xf]  ;;  %v3104_v35 = vld [vmem:[#allocation4 + $0xd0] sm:$0xf0] }
 0x5b2   :  { %1979 = vmatpush.bf16.msra.mxu0 %v2802_v46 }
 0x5b6   :  { %1980 = vmatpush.bf16.msra.mxu0 %v2790_v54 }
 0x5bb   :  { %v1388_v59 = vpop.permute.xlu2 %1387 }
 0x5bc   :  { %1390 = vst.msk [vmem:[#allocation2 + $0x4] sm:$0xf] %vm961_vm3, %v1388_v59  ;;  %v2934_v59 = vor.u32 %v3131_v57, %v2933_v56  ;;  %v2017_v57 = vld [vmem:[%s3880_s6] sm:$0x7] }
 0x5bd   :  { %v2021_v39 = vperm.slane %v2017_v57, 2 }
 0x5c3   :  { %v1477_v63 = vld [vmem:[#allocation2] sm:$0xff] }
 0x5c4   :  { %v1569_v0 = vunpack.c.l.b16 %v1477_v63  ;;  %v1570_v1 = vunpack.c.h.b16 %v1477_v63  ;;  %v2778_v63 = vor.u32 %v3092_v61, %v2777_v60  ;;  %v2020_v60 = vperm.slane %v2017_v57, 1 }
 0x5c6   :  { %v3836_v2 = vpack.c.b16 %v1569_v0, %v1569_v0  ;;  %v3838_v3 = vpack.c.b16 %v1570_v1, %v1570_v1  ;;  %v3116_v0 = vld [vmem:[#allocation4 + $0x130] sm:$0xf0]  ;;  %v2921_v1 = vld [vmem:[#allocation4 + $0x188] sm:$0xf]  ;;  %1981 = vmatpush.bf16.msra.mxu0 %v2778_v63 }
 0x5c8   :  { %1908 = vmatmul.bf16.vlgmr.msra.gmra.mxu2 %v3836_v2  ;;  %1921 = vmatmul.bf16.vlgmr.msrb.gmra.mxu3 %v3838_v3 }
 0x5c9   :  { %1991 = vmatpush.bf16.msrb.mxu3 %v2910_v40 }
 0x5ca   :  { %1982 = vmatpush.bf16.msra.mxu0 %v2766_v11 }
 0x5cd   :  { %1992 = vmatpush.bf16.msrb.mxu3 %v2898_v48 }
 0x5ce   :  { %1983 = vmatpush.bf16.msra.mxu0 %v2754_v50 }
 0x5d1   :  { %v1393_v6 = vpop.permute.xlu0 %1392  ;;  %1993 = vmatpush.bf16.msrb.mxu3 %v2886_v58 }
 0x5d2   :  { %v1395_v7 = vsel %vm92_vm0, %v3193_v5, %v1393_v6  ;;  %v3850_v5 = vld [vmem:[%s3879_s5] sm:$0x7]  ;;  %v2874_v6 = vor.u32 %v3116_v0, %v2873_v62  ;;  %1984 = vmatpush.bf16.msra.mxu0 %v2742_v29 }
 0x5d3   :  { %v1396_v8 = vpack.c.bf16 %v1395_v7, %v1395_v7  ;;  %v2922_v7 = vor.u32 %v3128_v4, %v2921_v1  ;;  %v1562_v28 = vperm.slane %v3850_v5, 1 }
 0x5d5   :  { %1469 = vmatmul.bf16.vlgmr.msrb.gmra.mxu1 %v1396_v8  ;;  %v1561_v8 = vperm.slane %v3850_v5, 0  ;;  %1994 = vmatpush.bf16.msrb.mxu3 %v2874_v6 }
 0x5d6   :  { %2008 = vmatpush.bf16.msrb.mxu1 %v2958_v42  ;;  %v2826_v42 = vor.u32 %v3104_v35, %v2825_v34  ;;  %1985 = vmatpush.bf16.msra.mxu0 %v2730_v41 }
 0x5d8   :  { %1960 = vmatmul.bf16.vlgmr.msrb.gmra.mxu2 %v3838_v3 }
 0x5d9   :  { %1995 = vmatpush.bf16.msrb.mxu3 %v2862_v15 }
 0x5da   :  { %2009 = vmatpush.bf16.msrb.mxu1 %v2946_v49 }
 0x5dd   :  { %1996 = vmatpush.bf16.msrb.mxu3 %v2850_v22 }
 0x5de   :  { %2010 = vmatpush.bf16.msrb.mxu1 %v2934_v59  ;;  %v2019_v59 = vperm.slane %v2017_v57, 0 }
 0x5e1   :  { %1997 = vmatpush.bf16.msrb.mxu3 %v2838_v30 }
 0x5e2   :  { %2011 = vmatpush.bf16.msrb.mxu1 %v2922_v7 }
 0x5e5   :  { %1947 = vmatmul.bf16.vlgmr.msra.gmra.mxu1 %v3836_v2  ;;  %1998 = vmatpush.bf16.msrb.mxu3 %v2826_v42 }
 0x64b   :  { %v1909_v12 = vpop.f32.mrf.mxu2  ;;  %v1922_v14 = vpop.f32.mrf.mxu3 }
 0x64c   :  { %v1910_v20 = vadd.f32 %v1909_v12, %v1561_v8 }
 0x64e   :  { %v1923_v25 = vadd.f32 %v1922_v14, %v1910_v20 }
 0x652   :  { %v1470_v33 = vpop.f32.mrf.mxu1 }
 0x653   :  { %v1471_v37 = vadd.f32 %v3196_v36, %v1470_v33  ;;  %v1911_v38 = vpop.f32.mrf.mxu2  ;;  %v1924_v40 = vpop.f32.mrf.mxu3 }
 0x655   :  { %3194 = vtanh.f32 %v1471_v37 }
 0x65a   :  { %v1472_v43 = vpop.f32.mrf.mxu1 }
 0x65b   :  { %v3195_v44 = vpop.eup %3194  ;;  %v1961_v45 = vpop.f32.mrf.mxu2 }
 0x65c   :  { %v1475_v46 = vpack.c.bf16 %v3195_v44, %v3195_v44 }
 0x65e   :  { %1476 = vst.msk [vmem:[#allocation2 + $0x8] sm:$0xf] %vm618_vm2, %v1475_v46 }
 0x662   :  { %v1948_v47 = vpop.f32.mrf.mxu1 }
 0x663   :  { %v1949_v31 = vadd.f32 %v1948_v47, %v1562_v28  ;;  %v1963_v48 = vpop.f32.mrf.mxu2 }
 0x665   :  { %v1478_v49 = vld [vmem:[#allocation2 + $0x8] sm:$0xf]  ;;  %v1962_v51 = vadd.f32 %v1961_v45, %v1949_v31 }
 0x666   :  { %v1571_v52 = vunpack.c.l.b16 %v1478_v49 }
 0x668   :  { %v1574_v53 = vpack.c.b16 %v1571_v52, %v1571_v52 }
 0x66a   :  { %2959 = vmatmul.msk.bf16.vlgmr.msrb.gmra.mxu0 %vm92_vm0, %v1574_v53  ;;  %v1950_v54 = vpop.f32.mrf.mxu1  ;;  %2960 = vmatmul.msk.bf16.vlgmr.msra.gmra.mxu3 %vm92_vm0, %v1574_v53 }
 0x66b   :  { %2961 = vmatmul.msk.bf16.vlgmr.msrb.gmra.mxu1 %vm92_vm0, %v1574_v53 }
 0x67a   :  { %1986 = vmatmul.bf16.vlgmr.msra.gmra.mxu0 %v3836_v2  ;;  %1999 = vmatmul.bf16.vlgmr.msrb.gmra.mxu3 %v3838_v3  ;;  %v1563_v3 = vperm.slane %v3850_v5, 2 }
 0x6e7   :  { %v1935_v55 = vpop.f32.mrf.mxu0 }
 0x6e8   :  { %v2013_v56 = vpop.f32.mrf.mxu1  ;;  %v1936_v58 = vadd.f32 %v1935_v55, %v1923_v25 }
 0x6ea   :  { %v2025_v0 = vmul.f32 %v2019_v59, %v1936_v58 }
 0x6ed   :  { %v1974_v61 = vpop.f32.mrf.mxu3 }
 0x6ee   :  { %v1975_v62 = vadd.f32 %v1974_v61, %v1962_v51 }
 0x6ef   :  { %v1937_v63 = vpop.f32.mrf.mxu0 }
 0x6f0   :  { %v2026_v1 = vmul.f32 %v2020_v60, %v1975_v62  ;;  %v2015_v4 = vpop.f32.mrf.mxu1 }
 0x6f2   :  { %v2028_v6 = vadd.f32 %v2026_v1, %v2025_v0 }
 0x6f5   :  { %v1976_v7 = vpop.f32.mrf.mxu3 }
 0x6f7   :  { %v1987_v2 = vpop.f32.mrf.mxu0 }
 0x6f8   :  { %v1988_v8 = vadd.f32 %v1987_v2, %v1563_v3 }
 0x6fd   :  { %v2000_v9 = vpop.f32.mrf.mxu3 }
 0x6fe   :  { %v2001_v10 = vadd.f32 %v2000_v9, %v1988_v8 }
 0x6ff   :  { %v1989_v11 = vpop.f32.mrf.mxu0 }
 0x700   :  { %v2014_v13 = vadd.f32 %v2013_v56, %v2001_v10 }
 0x702   :  { %v2027_v12 = vmul.f32 %v2021_v39, %v2014_v13 }
 0x704   :  { %v2029_v14 = vsel %vm92_vm0, %v2027_v12, 0.0 }
 0x705   :  { %v2002_v15 = vpop.f32.mrf.mxu3  ;;  %v2030_v16 = vadd.f32 %v2029_v14, %v2028_v6 }
 0x707   :  { %2031 = vadd.xlane.f32.xlu0 %v2030_v16 }
 0x77a   :  { %v2032_v18 = vpop.xlane.xlu0 %2031 }
 0x77b   :  { %v2035_v20 = vadd.f32 %v2034_v17, %v2032_v18 }
 0x77d   :  { %2037 = vst.msk [vmem:[%s3882_s8] sm:$0xff] %vm2036_vm4, %v2035_v20 }
 0x77e   :  { %2042 = vsyncpa [#allocation5], 1 }

</bundles_post_ra>
